<compile_context>
chip_gen: v7x
topology: tpu7x:2x2x1
jax: 0.10.0
libtpu: 0.0.40
codegen_flags: <defaults>
</compile_context>

<pallas_src>
import jax
import jax.numpy as jnp
from jax import lax
from jax.experimental import pallas as pl
from jax.experimental.pallas import tpu as pltpu


# ----------------------------- in-kernel helpers -----------------------------

def _silu(x):
    return x * jax.nn.sigmoid(x)


def _layernorm(x, g, b, eps=1e-5):
    # fused single-pass statistics: var = E[x^2] - mu^2
    mu = jnp.mean(x, axis=-1, keepdims=True)
    msq = jnp.mean(x * x, axis=-1, keepdims=True)
    var = msq - mu * mu
    return (x - mu) * lax.rsqrt(var + eps) * g + b


def _bf16(x):
    return x.astype(jnp.bfloat16)


# ----------------------------- fused GNN kernel -------------------------------
# Grid axis 0 = layer index ("arbitrary"). The hidden state h and the one-hot
# gather/scatter matrices live in VMEM scratch across grid iterations.
#   l == 0     : embedding_in (Linear -> SiLU -> Linear) + one-hot construction
#   every l    : hn = LayerNorm(h); GCL (edge MLP, scatter-sum, node MLP); h = hn + dh
#   l == L - 1 : embedding_out (Linear -> SiLU -> Linear), lane-dense output

def _gnn_fused_kernel(x_ref, rc_ref, rt_ref,
                      wi1_ref, bi1_ref, wi2_ref, bi2_ref,
                      wo1_ref, bo1_ref, wo2_ref, bo2_ref,
                      ew1_ref, ew2_ref, nw1_ref, nw2_ref, ea_ref, vec_ref,
                      o_ref,
                      h_scr, ohr_scr, ohc_scr, ohtr_scr):
    l = pl.program_id(0)
    N, H = h_scr.shape
    E = ohr_scr.shape[0]

    # --- first grid step only: embedding_in + one-hot construction (hoisted) ---
    @pl.when(l == 0)
    def _():
        x = x_ref[...]                                           # bf16 (N, F_in)
        t = _silu(jnp.dot(x, wi1_ref[...],
                          preferred_element_type=jnp.float32) + bi1_ref[...])
        h_scr[...] = jnp.dot(_bf16(t), wi2_ref[...],
                             preferred_element_type=jnp.float32) + bi2_ref[...]

        # Gather / scatter one-hots built once and reused for every layer.
        # TODO(synk): out-of-range row/col silently yield zero rows (messages
        # dropped) instead of erroring like PyTorch indexing.
        row_e1 = rc_ref[:, 0:1]                                  # (E, 1) int32
        col_e1 = rc_ref[:, 1:2]                                  # (E, 1) int32
        ids_en = lax.broadcasted_iota(jnp.int32, (E, N), 1)
        ohr_scr[...] = (row_e1 == ids_en).astype(jnp.bfloat16)   # (E, N) gather
        ohc_scr[...] = (col_e1 == ids_en).astype(jnp.bfloat16)   # (E, N) gather
        ids_ne = lax.broadcasted_iota(jnp.int32, (N, E), 0)
        ohtr_scr[...] = (rt_ref[...] == ids_ne).astype(jnp.bfloat16)  # (N, E) scatter

    h = h_scr[...]                                               # (N, H) f32

    # packed per-layer LN / bias vectors (padded to 16 rows): order
    # [norm_g, norm_b, eb1(unused, folded into ea_proj), eln_g, eln_b, eb2,
    #  nb1, nln_g, nln_b, nb2, 0...]
    vec = vec_ref[0]
    norm_g, norm_b = vec[0:1], vec[1:2]
    eln_g, eln_b, eb2 = vec[3:4], vec[4:5], vec[5:6]
    nb1, nln_g, nln_b, nb2 = vec[6:7], vec[7:8], vec[8:9], vec[9:10]

    hn = _layernorm(h, norm_g, norm_b)                           # pre-norm (norm_i)
    hn_b = _bf16(hn)

    # --- edge MLP: project-then-gather (N-row projections, one-hot gathers) ---
    ew1 = ew1_ref[0]                                             # (2H, H) bf16
    proj_src = jnp.dot(hn_b, ew1[:H], preferred_element_type=jnp.float32)   # (N, H)
    proj_dst = jnp.dot(hn_b, ew1[H:], preferred_element_type=jnp.float32)   # (N, H)
    m = (jnp.dot(ohr_scr[...], _bf16(proj_src), preferred_element_type=jnp.float32)
         + jnp.dot(ohc_scr[...], _bf16(proj_dst), preferred_element_type=jnp.float32)
         + ea_ref[0])                                            # edge_attr proj + eb1
    m = _silu(_layernorm(m, eln_g, eln_b))
    m = jnp.dot(_bf16(m), ew2_ref[0], preferred_element_type=jnp.float32) + eb2

    # scatter-sum onto nodes via the pre-built transposed one-hot (no .T)
    agg = jnp.dot(ohtr_scr[...], _bf16(m), preferred_element_type=jnp.float32)  # (N, H)

    # --- node MLP on concat([hn, agg]) ---
    nw1 = nw1_ref[0]                                             # (2H, H) bf16
    d = (jnp.dot(hn_b, nw1[:H], preferred_element_type=jnp.float32)
         + jnp.dot(_bf16(agg), nw1[H:], preferred_element_type=jnp.float32)
         + nb1)
    d = _silu(_layernorm(d, nln_g, nln_b))
    d = jnp.dot(_bf16(d), nw2_ref[0], preferred_element_type=jnp.float32) + nb2

    h_new = hn + d
    h_scr[...] = h_new

    # --- last grid step only: embedding_out, 128-lane dense output ---
    @pl.when(l == pl.num_programs(0) - 1)
    def _():
        t = _silu(jnp.dot(_bf16(h_new), wo1_ref[...],
                          preferred_element_type=jnp.float32) + bo1_ref[...])
        o_ref[...] = jnp.dot(_bf16(t), wo2_ref[...],
                             preferred_element_type=jnp.float32) + bo2_ref[...]


# ----------------------------- wrapper ----------------------------------------

def _pick_vmem_limit_bytes():
    cap = None
    try:
        cap = getattr(pltpu.get_tpu_info(), "vmem_capacity_bytes", None)
    except Exception:
        cap = None
    if not cap:
        return 32 * 1024 * 1024                 # conservative default
    # ~75% of physical: ~96 MiB on v5e/v6e (128 MiB), ~48 MiB on v7x (64 MiB)
    return min(int(cap) * 3 // 4, 100 * 1024 * 1024)


def gnn_forward(params, h, row, col, edge_attr):
    N, F_in = h.shape
    E = row.shape[0]
    H = params['emb_in_w2'].shape[1]
    Fe = edge_attr.shape[1]
    L = params['ew1'].shape[0]
    F_out = params['emb_out_w2'].shape[1]
    F_out_pad = max(128, ((F_out + 127) // 128) * 128)

    bf = jnp.bfloat16

    # index data: (E, 2) for the (E, N) gather one-hots, (1, E) for the (N, E)
    # scatter one-hot (both orientations built transpose-free in-kernel, once)
    rc = jnp.stack([row.astype(jnp.int32), col.astype(jnp.int32)], axis=1)   # (E, 2)
    rt = row.astype(jnp.int32).reshape(1, E)                                 # (1, E)

    # precompute the K=Fe edge-attr projection (+ eb1) per layer: (L, E, H) f32
    ea_proj = (jnp.einsum('ef,lfh->leh', edge_attr, params['ew1'][:, 2 * H:, :])
               + params['vecs'][:, 2:3, :])

    # first-layer edge weights without the edge_attr rows
    ew1_2h = params['ew1'][:, :2 * H, :].astype(bf)                          # (L, 2H, H)

    # pad per-layer vectors to 16 sublanes
    vecs_pad = jnp.concatenate(
        [params['vecs'], jnp.zeros((L, 6, H), jnp.float32)], axis=1)         # (L, 16, H)

    # pad emb_out last layer to a lane-dense 128-wide output; slice in wrapper
    wo2_p = jnp.zeros((H, F_out_pad), jnp.float32).at[:, :F_out].set(params['emb_out_w2'])
    bo2_p = jnp.zeros((1, F_out_pad), jnp.float32).at[:, :F_out].set(params['emb_out_b2'])

    graph_args = (h.astype(bf), rc, rt)
    emb_args = (params['emb_in_w1'].astype(bf), params['emb_in_b1'],
                params['emb_in_w2'].astype(bf), params['emb_in_b2'],
                params['emb_out_w1'].astype(bf), params['emb_out_b1'],
                wo2_p.astype(bf), bo2_p)
    layer_args = (ew1_2h, params['ew2'].astype(bf),
                  params['nw1'].astype(bf), params['nw2'].astype(bf),
                  ea_proj, vecs_pad)
    args = graph_args + emb_args + layer_args

    def _const_spec(a):
        nd = a.ndim
        return pl.BlockSpec(a.shape, lambda l, nd=nd: (0,) * nd)

    def _layer_spec(a):
        return pl.BlockSpec((1,) + tuple(a.shape[1:]), lambda l: (l, 0, 0))

    in_specs = ([_const_spec(a) for a in graph_args + emb_args]
                + [_layer_spec(a) for a in layer_args])

    # rough cost estimate (advisory)
    flops = 2 * N * (F_in * H + H * H)                       # embedding_in
    flops += L * (2 * 2 * N * H * H                          # src/dst projections
                  + 2 * 2 * E * N * H                        # one-hot gathers
                  + 2 * E * H * H                            # edge MLP 2nd linear
                  + 2 * N * E * H                            # scatter-sum
                  + 2 * N * (2 * H * H + H * H))             # node MLP
    flops += 2 * N * (H * H + H * F_out_pad)                 # embedding_out
    transcendentals = 2 * N * H + L * (E * H + N * H)
    bytes_accessed = sum(int(a.size) * a.dtype.itemsize for a in args) + N * F_out_pad * 4

    out = pl.pallas_call(
        _gnn_fused_kernel,
        out_shape=jax.ShapeDtypeStruct((N, F_out_pad), jnp.float32),
        grid_spec=pltpu.PrefetchScalarGridSpec(
            num_scalar_prefetch=0,
            grid=(L,),
            in_specs=in_specs,
            out_specs=pl.BlockSpec((N, F_out_pad), lambda l: (0, 0)),
            scratch_shapes=[
                pltpu.VMEM((N, H), jnp.float32),       # resident hidden state
                pltpu.VMEM((E, N), jnp.bfloat16),      # gather one-hot (row)
                pltpu.VMEM((E, N), jnp.bfloat16),      # gather one-hot (col)
                pltpu.VMEM((N, E), jnp.bfloat16),      # scatter one-hot (row^T)
            ],
        ),
        compiler_params=pltpu.CompilerParams(
            dimension_semantics=("arbitrary",),
            vmem_limit_bytes=_pick_vmem_limit_bytes(),
        ),
        cost_estimate=pl.CostEstimate(flops=int(flops),
                                      transcendentals=int(transcendentals),
                                      bytes_accessed=int(bytes_accessed)),
    )(*args)
    return out[:, :F_out]


# ----------------------------- parameters -------------------------------------

def _linear(key, fan_in, fan_out):
    kw, kb = jax.random.split(key)
    w = 0.1 * jax.random.normal(kw, (fan_in, fan_out), jnp.float32)   # stored [in, out]
    b = 0.05 * jax.random.normal(kb, (1, fan_out), jnp.float32)
    return w, b


def init_gnn_params(key, in_node_nf, out_node_nf, hidden_nf, in_edge_nf, n_layers):
    # exactly 4 embedding linears + 4 linears per GCL layer
    keys = iter(jax.random.split(key, 4 + 4 * n_layers))
    p = {}
    p['emb_in_w1'], p['emb_in_b1'] = _linear(next(keys), in_node_nf, hidden_nf)
    p['emb_in_w2'], p['emb_in_b2'] = _linear(next(keys), hidden_nf, hidden_nf)
    p['emb_out_w1'], p['emb_out_b1'] = _linear(next(keys), hidden_nf, hidden_nf)
    p['emb_out_w2'], p['emb_out_b2'] = _linear(next(keys), hidden_nf, out_node_nf)

    ones = jnp.ones((hidden_nf,), jnp.float32)
    zeros = jnp.zeros((hidden_nf,), jnp.float32)
    ew1s, ew2s, nw1s, nw2s, vecs = [], [], [], [], []
    for _ in range(n_layers):
        ew1, eb1 = _linear(next(keys), 2 * hidden_nf + in_edge_nf, hidden_nf)
        ew2, eb2 = _linear(next(keys), hidden_nf, hidden_nf)
        nw1, nb1 = _linear(next(keys), 2 * hidden_nf, hidden_nf)
        nw2, nb2 = _linear(next(keys), hidden_nf, hidden_nf)
        ew1s.append(ew1); ew2s.append(ew2); nw1s.append(nw1); nw2s.append(nw2)
        # packed order: [norm_g, norm_b, eb1, eln_g, eln_b, eb2, nb1, nln_g, nln_b, nb2]
        vecs.append(jnp.stack([ones, zeros,
                               eb1[0], ones, zeros, eb2[0],
                               nb1[0], ones, zeros, nb2[0]], axis=0))
    p['ew1'] = jnp.stack(ew1s)          # (L, 2H+Fe, H)
    p['ew2'] = jnp.stack(ew2s)          # (L, H, H)
    p['nw1'] = jnp.stack(nw1s)          # (L, 2H, H)
    p['nw2'] = jnp.stack(nw2s)          # (L, H, H)
    p['vecs'] = jnp.stack(vecs)         # (L, 10, H)
    return p


# ----------------------------- pure-JAX reference ------------------------------

def gnn_reference(params, h, row, col, edge_attr):
    def ln(x, g, b, eps=1e-5):
        mu = jnp.mean(x, axis=-1, keepdims=True)
        var = jnp.mean((x - mu) ** 2, axis=-1, keepdims=True)
        return (x - mu) / jnp.sqrt(var + eps) * g + b

    def silu(x):
        return x * jax.nn.sigmoid(x)

    H = params['emb_in_w2'].shape[1]
    h = silu(h @ params['emb_in_w1'] + params['emb_in_b1'])
    h = h @ params['emb_in_w2'] + params['emb_in_b2']
    N = h.shape[0]
    for i in range(params['ew1'].shape[0]):
        vec = params['vecs'][i]
        hn = ln(h, vec[0], vec[1])
        src, dst = hn[row], hn[col]
        ew1 = params['ew1'][i]
        m = src @ ew1[:H] + dst @ ew1[H:2 * H] + edge_attr @ ew1[2 * H:] + vec[2]
        m = silu(ln(m, vec[3], vec[4]))
        m = m @ params['ew2'][i] + vec[5]
        agg = jax.ops.segment_sum(m, row, num_segments=N)
        nw1 = params['nw1'][i]
        d = hn @ nw1[:H] + agg @ nw1[H:] + vec[6]
        d = silu(ln(d, vec[7], vec[8]))
        d = d @ params['nw2'][i] + vec[9]
        h = hn + d
    h = silu(h @ params['emb_out_w1'] + params['emb_out_b1'])
    h = h @ params['emb_out_w2'] + params['emb_out_b2']
    return h


# ----------------------------- main --------------------------------------------

if __name__ == "__main__":
    IN_NODE_NF, OUT_NODE_NF, HIDDEN_NF, IN_EDGE_NF, N_LAYERS = 16, 8, 32, 4, 2
    N_NODES, N_EDGES = 8, 16

    key = jax.random.PRNGKey(0)
    k_h, k_r, k_c, k_e, k_p = jax.random.split(key, 5)

    h = jax.random.normal(k_h, (N_NODES, IN_NODE_NF), jnp.float32)
    row = jax.random.randint(k_r, (N_EDGES,), 0, N_NODES, jnp.int32)
    col = jax.random.randint(k_c, (N_EDGES,), 0, N_NODES, jnp.int32)
    edge_attr = jax.random.normal(k_e, (N_EDGES, IN_EDGE_NF), jnp.float32)

    params = init_gnn_params(k_p, IN_NODE_NF, OUT_NODE_NF, HIDDEN_NF,
                             IN_EDGE_NF, N_LAYERS)

    out = jax.block_until_ready(gnn_forward(params, h, row, col, edge_attr))
    ref = jax.block_until_ready(gnn_reference(params, h, row, col, edge_attr))

    assert out.shape == (N_NODES, OUT_NODE_NF), out.shape
    max_err = float(jnp.max(jnp.abs(out - ref)))
    # bf16 MXU operands vs f32 reference: allow small numeric slack
    assert max_err < 5e-2, f"max abs err {max_err}"
    print("KERNEL_OK")
</pallas_src>

<mosaic_0001>
module attributes {stable_mosaic.version = 11 : i64} {
  func.func @_gnn_fused_kernel(%arg0: i32, %arg1: memref<8x16xbf16, #tpu.memory_space<vmem>>, %arg2: memref<16x2xi32, #tpu.memory_space<vmem>>, %arg3: memref<1x16xi32, #tpu.memory_space<vmem>>, %arg4: memref<16x32xbf16, #tpu.memory_space<vmem>>, %arg5: memref<1x32xf32, #tpu.memory_space<vmem>>, %arg6: memref<32x32xbf16, #tpu.memory_space<vmem>>, %arg7: memref<1x32xf32, #tpu.memory_space<vmem>>, %arg8: memref<32x32xbf16, #tpu.memory_space<vmem>>, %arg9: memref<1x32xf32, #tpu.memory_space<vmem>>, %arg10: memref<32x128xbf16, #tpu.memory_space<vmem>>, %arg11: memref<1x128xf32, #tpu.memory_space<vmem>>, %arg12: memref<1x64x32xbf16, #tpu.memory_space<vmem>>, %arg13: memref<1x32x32xbf16, #tpu.memory_space<vmem>>, %arg14: memref<1x64x32xbf16, #tpu.memory_space<vmem>>, %arg15: memref<1x32x32xbf16, #tpu.memory_space<vmem>>, %arg16: memref<1x16x32xf32, #tpu.memory_space<vmem>>, %arg17: memref<1x16x32xf32, #tpu.memory_space<vmem>>, %arg18: memref<8x128xf32, #tpu.memory_space<vmem>>, %arg19: memref<8x32xf32, #tpu.memory_space<vmem>>, %arg20: memref<16x8xbf16, #tpu.memory_space<vmem>>, %arg21: memref<16x8xbf16, #tpu.memory_space<vmem>>, %arg22: memref<8x16xbf16, #tpu.memory_space<vmem>>) attributes {dimension_semantics = [#tpu.dimension_semantics<arbitrary>], iteration_bounds = array<i64: 2>, scalar_prefetch = 0 : i64, scratch_operands = 4 : i64, tpu.core_type = #tpu.core_type<tc>, window_params = [{pipeline_mode = #tpu.pipeline_mode<synchronous>, transform_indices = @transform_0, window_bounds = array<i64: 8, 16>}, {pipeline_mode = #tpu.pipeline_mode<synchronous>, transform_indices = @transform_1, window_bounds = array<i64: 16, 2>}, {pipeline_mode = #tpu.pipeline_mode<synchronous>, transform_indices = @transform_2, window_bounds = array<i64: 1, 16>}, {pipeline_mode = #tpu.pipeline_mode<synchronous>, transform_indices = @transform_3, window_bounds = array<i64: 16, 32>}, {pipeline_mode = #tpu.pipeline_mode<synchronous>, transform_indices = @transform_4, window_bounds = array<i64: 1, 32>}, {pipeline_mode = #tpu.pipeline_mode<synchronous>, transform_indices = @transform_5, window_bounds = array<i64: 32, 32>}, {pipeline_mode = #tpu.pipeline_mode<synchronous>, transform_indices = @transform_6, window_bounds = array<i64: 1, 32>}, {pipeline_mode = #tpu.pipeline_mode<synchronous>, transform_indices = @transform_7, window_bounds = array<i64: 32, 32>}, {pipeline_mode = #tpu.pipeline_mode<synchronous>, transform_indices = @transform_8, window_bounds = array<i64: 1, 32>}, {pipeline_mode = #tpu.pipeline_mode<synchronous>, transform_indices = @transform_9, window_bounds = array<i64: 32, 128>}, {pipeline_mode = #tpu.pipeline_mode<synchronous>, transform_indices = @transform_10, window_bounds = array<i64: 1, 128>}, {transform_indices = @transform_11, window_bounds = array<i64: 1, 64, 32>}, {transform_indices = @transform_12, window_bounds = array<i64: 1, 32, 32>}, {transform_indices = @transform_13, window_bounds = array<i64: 1, 64, 32>}, {transform_indices = @transform_14, window_bounds = array<i64: 1, 32, 32>}, {transform_indices = @transform_15, window_bounds = array<i64: 1, 16, 32>}, {transform_indices = @transform_16, window_bounds = array<i64: 1, 16, 32>}, {pipeline_mode = #tpu.pipeline_mode<synchronous>, transform_indices = @transform_17, window_bounds = array<i64: 8, 128>}]} {
    %c0_i32 = arith.constant 0 : i32
    %0 = arith.cmpi eq, %arg0, %c0_i32 : i32
    %1 = arith.extui %0 : i1 to i32
    %c0_i32_0 = arith.constant 0 : i32
    %2 = arith.cmpi ne, %1, %c0_i32_0 : i32
    scf.if %2 {
      %c0_54 = arith.constant 0 : index
      %c0_55 = arith.constant 0 : index
      %140 = vector.load %arg1[%c0_54, %c0_55] : memref<8x16xbf16, #tpu.memory_space<vmem>>, vector<8x16xbf16>
      %c0_56 = arith.constant 0 : index
      %c0_57 = arith.constant 0 : index
      %141 = vector.load %arg4[%c0_56, %c0_57] : memref<16x32xbf16, #tpu.memory_space<vmem>>, vector<16x32xbf16>
      %cst_58 = arith.constant dense<0.000000e+00> : vector<8x32xf32>
      %142 = tpu.matmul %140, %141, %cst_58 {dimension_numbers = #tpu.dot_dimension_numbers<[1], [0], [0], [1], [0, 0, 1, 1], [], []>} : vector<8x16xbf16>, vector<16x32xbf16>, vector<8x32xf32> -> vector<8x32xf32>
      %c0_59 = arith.constant 0 : index
      %c0_60 = arith.constant 0 : index
      %143 = vector.load %arg5[%c0_59, %c0_60] : memref<1x32xf32, #tpu.memory_space<vmem>>, vector<1x32xf32>
      %144 = vector.broadcast %143 : vector<1x32xf32> to vector<8x32xf32>
      %145 = arith.addf %142, %144 : vector<8x32xf32>
      %146 = arith.negf %145 : vector<8x32xf32>
      %147 = math.exp %146 : vector<8x32xf32>
      %cst_61 = arith.constant 1.000000e+00 : f32
      %148 = vector.broadcast %cst_61 : f32 to vector<8x32xf32>
      %149 = arith.addf %148, %147 : vector<8x32xf32>
      %150 = arith.divf %148, %149 : vector<8x32xf32>
      %151 = arith.mulf %145, %150 : vector<8x32xf32>
      %152 = arith.truncf %151 : vector<8x32xf32> to vector<8x32xbf16>
      %c0_62 = arith.constant 0 : index
      %c0_63 = arith.constant 0 : index
      %153 = vector.load %arg6[%c0_62, %c0_63] : memref<32x32xbf16, #tpu.memory_space<vmem>>, vector<32x32xbf16>
      %cst_64 = arith.constant dense<0.000000e+00> : vector<8x32xf32>
      %154 = tpu.matmul %152, %153, %cst_64 {dimension_numbers = #tpu.dot_dimension_numbers<[1], [0], [0], [1], [0, 0, 1, 1], [], []>} : vector<8x32xbf16>, vector<32x32xbf16>, vector<8x32xf32> -> vector<8x32xf32>
      %c0_65 = arith.constant 0 : index
      %c0_66 = arith.constant 0 : index
      %155 = vector.load %arg7[%c0_65, %c0_66] : memref<1x32xf32, #tpu.memory_space<vmem>>, vector<1x32xf32>
      %156 = vector.broadcast %155 : vector<1x32xf32> to vector<8x32xf32>
      %157 = arith.addf %154, %156 : vector<8x32xf32>
      %c0_67 = arith.constant 0 : index
      %c0_68 = arith.constant 0 : index
      %158 = vector.load %arg19[%c0_67, %c0_68] : memref<8x32xf32, #tpu.memory_space<vmem>>, vector<8x32xf32>
      tpu.vector_store %arg19[%c0_67, %c0_68], %157 {strides = array<i32>} : memref<8x32xf32, #tpu.memory_space<vmem>>, vector<8x32xf32>,
      %c0_69 = arith.constant 0 : index
      %c0_70 = arith.constant 0 : index
      %159 = vector.load %arg2[%c0_69, %c0_70] : memref<16x2xi32, #tpu.memory_space<vmem>>, vector<16x1xi32>
      %c0_71 = arith.constant 0 : index
      %c1 = arith.constant 1 : index
      %160 = vector.load %arg2[%c0_71, %c1] : memref<16x2xi32, #tpu.memory_space<vmem>>, vector<16x1xi32>
      %161 = tpu.iota {dimensions = array<i32: 1>} : vector<16x8xi32>
      %162 = vector.broadcast %159 : vector<16x1xi32> to vector<16x8xi32>
      %163 = arith.cmpi eq, %162, %161 : vector<16x8xi32>
      %164 = arith.extui %163 : vector<16x8xi1> to vector<16x8xi32>
      %165 = arith.sitofp %164 : vector<16x8xi32> to vector<16x8xf32>
      %166 = arith.truncf %165 : vector<16x8xf32> to vector<16x8xbf16>
      %c0_72 = arith.constant 0 : index
      %c0_73 = arith.constant 0 : index
      %167 = vector.load %arg20[%c0_72, %c0_73] : memref<16x8xbf16, #tpu.memory_space<vmem>>, vector<16x8xbf16>
      tpu.vector_store %arg20[%c0_72, %c0_73], %166 {strides = array<i32>} : memref<16x8xbf16, #tpu.memory_space<vmem>>, vector<16x8xbf16>,
      %168 = vector.broadcast %160 : vector<16x1xi32> to vector<16x8xi32>
      %169 = arith.cmpi eq, %168, %161 : vector<16x8xi32>
      %170 = arith.extui %169 : vector<16x8xi1> to vector<16x8xi32>
      %171 = arith.sitofp %170 : vector<16x8xi32> to vector<16x8xf32>
      %172 = arith.truncf %171 : vector<16x8xf32> to vector<16x8xbf16>
      %c0_74 = arith.constant 0 : index
      %c0_75 = arith.constant 0 : index
      %173 = vector.load %arg21[%c0_74, %c0_75] : memref<16x8xbf16, #tpu.memory_space<vmem>>, vector<16x8xbf16>
      tpu.vector_store %arg21[%c0_74, %c0_75], %172 {strides = array<i32>} : memref<16x8xbf16, #tpu.memory_space<vmem>>, vector<16x8xbf16>,
      %174 = tpu.iota {dimensions = array<i32: 0>} : vector<8x16xi32>
      %c0_76 = arith.constant 0 : index
      %c0_77 = arith.constant 0 : index
      %175 = vector.load %arg3[%c0_76, %c0_77] : memref<1x16xi32, #tpu.memory_space<vmem>>, vector<1x16xi32>
      %176 = vector.broadcast %175 : vector<1x16xi32> to vector<8x16xi32>
      %177 = arith.cmpi eq, %176, %174 : vector<8x16xi32>
      %178 = arith.extui %177 : vector<8x16xi1> to vector<8x16xi32>
      %179 = arith.sitofp %178 : vector<8x16xi32> to vector<8x16xf32>
      %180 = arith.truncf %179 : vector<8x16xf32> to vector<8x16xbf16>
      %c0_78 = arith.constant 0 : index
      %c0_79 = arith.constant 0 : index
      %181 = vector.load %arg22[%c0_78, %c0_79] : memref<8x16xbf16, #tpu.memory_space<vmem>>, vector<8x16xbf16>
      tpu.vector_store %arg22[%c0_78, %c0_79], %180 {strides = array<i32>} : memref<8x16xbf16, #tpu.memory_space<vmem>>, vector<8x16xbf16>,
    } else {
    }
    %c0 = arith.constant 0 : index
    %c0_1 = arith.constant 0 : index
    %3 = vector.load %arg19[%c0, %c0_1] : memref<8x32xf32, #tpu.memory_space<vmem>>, vector<8x32xf32>
    %c0_2 = arith.constant 0 : index
    %c0_3 = arith.constant 0 : index
    %c0_4 = arith.constant 0 : index
    %4 = vector.load %arg17[%c0_2, %c0_3, %c0_4] : memref<1x16x32xf32, #tpu.memory_space<vmem>>, vector<1x16x32xf32>
    %5 = vector.shape_cast %4 : vector<1x16x32xf32> to vector<16x32xf32>
    %6 = vector.extract_strided_slice %5 {offsets = [0, 0], sizes = [1, 32], strides = [1, 1]} : vector<16x32xf32> to vector<1x32xf32>
    %7 = vector.extract_strided_slice %5 {offsets = [1, 0], sizes = [1, 32], strides = [1, 1]} : vector<16x32xf32> to vector<1x32xf32>
    %8 = vector.extract_strided_slice %5 {offsets = [3, 0], sizes = [1, 32], strides = [1, 1]} : vector<16x32xf32> to vector<1x32xf32>
    %9 = vector.extract_strided_slice %5 {offsets = [4, 0], sizes = [1, 32], strides = [1, 1]} : vector<16x32xf32> to vector<1x32xf32>
    %10 = vector.extract_strided_slice %5 {offsets = [5, 0], sizes = [1, 32], strides = [1, 1]} : vector<16x32xf32> to vector<1x32xf32>
    %11 = vector.extract_strided_slice %5 {offsets = [6, 0], sizes = [1, 32], strides = [1, 1]} : vector<16x32xf32> to vector<1x32xf32>
    %12 = vector.extract_strided_slice %5 {offsets = [7, 0], sizes = [1, 32], strides = [1, 1]} : vector<16x32xf32> to vector<1x32xf32>
    %13 = vector.extract_strided_slice %5 {offsets = [8, 0], sizes = [1, 32], strides = [1, 1]} : vector<16x32xf32> to vector<1x32xf32>
    %14 = vector.extract_strided_slice %5 {offsets = [9, 0], sizes = [1, 32], strides = [1, 1]} : vector<16x32xf32> to vector<1x32xf32>
    %cst = arith.constant dense<0.000000e+00> : vector<8xf32>
    %15 = vector.multi_reduction <add>, %3, %cst [1] : vector<8x32xf32> to vector<8xf32>
    %16 = vector.shape_cast %15 : vector<8xf32> to vector<8x1xf32>
    %cst_5 = arith.constant 3.200000e+01 : f32
    %17 = vector.broadcast %cst_5 : f32 to vector<8x1xf32>
    %18 = arith.divf %16, %17 : vector<8x1xf32>
    %19 = arith.mulf %3, %3 : vector<8x32xf32>
    %cst_6 = arith.constant dense<0.000000e+00> : vector<8xf32>
    %20 = vector.multi_reduction <add>, %19, %cst_6 [1] : vector<8x32xf32> to vector<8xf32>
    %21 = vector.shape_cast %20 : vector<8xf32> to vector<8x1xf32>
    %cst_7 = arith.constant 3.200000e+01 : f32
    %22 = vector.broadcast %cst_7 : f32 to vector<8x1xf32>
    %23 = arith.divf %21, %22 : vector<8x1xf32>
    %24 = arith.mulf %18, %18 : vector<8x1xf32>
    %25 = arith.subf %23, %24 : vector<8x1xf32>
    %26 = vector.broadcast %18 : vector<8x1xf32> to vector<8x32xf32>
    %27 = arith.subf %3, %26 : vector<8x32xf32>
    %cst_8 = arith.constant 9.99999974E-6 : f32
    %28 = vector.broadcast %cst_8 : f32 to vector<8x1xf32>
    %29 = arith.addf %25, %28 : vector<8x1xf32>
    %30 = math.rsqrt %29 : vector<8x1xf32>
    %31 = vector.broadcast %30 : vector<8x1xf32> to vector<8x32xf32>
    %32 = arith.mulf %27, %31 : vector<8x32xf32>
    %33 = vector.broadcast %6 : vector<1x32xf32> to vector<8x32xf32>
    %34 = arith.mulf %32, %33 : vector<8x32xf32>
    %35 = vector.broadcast %7 : vector<1x32xf32> to vector<8x32xf32>
    %36 = arith.addf %34, %35 : vector<8x32xf32>
    %37 = arith.truncf %36 : vector<8x32xf32> to vector<8x32xbf16>
    %c0_9 = arith.constant 0 : index
    %c0_10 = arith.constant 0 : index
    %c0_11 = arith.constant 0 : index
    %38 = vector.load %arg12[%c0_9, %c0_10, %c0_11] : memref<1x64x32xbf16, #tpu.memory_space<vmem>>, vector<1x64x32xbf16>
    %39 = vector.shape_cast %38 : vector<1x64x32xbf16> to vector<64x32xbf16>
    %40 = vector.extract_strided_slice %39 {offsets = [0, 0], sizes = [32, 32], strides = [1, 1]} : vector<64x32xbf16> to vector<32x32xbf16>
    %cst_12 = arith.constant dense<0.000000e+00> : vector<8x32xf32>
    %41 = tpu.matmul %37, %40, %cst_12 {dimension_numbers = #tpu.dot_dimension_numbers<[1], [0], [0], [1], [0, 0, 1, 1], [], []>} : vector<8x32xbf16>, vector<32x32xbf16>, vector<8x32xf32> -> vector<8x32xf32>
    %42 = vector.extract_strided_slice %39 {offsets = [32, 0], sizes = [32, 32], strides = [1, 1]} : vector<64x32xbf16> to vector<32x32xbf16>
    %cst_13 = arith.constant dense<0.000000e+00> : vector<8x32xf32>
    %43 = tpu.matmul %37, %42, %cst_13 {dimension_numbers = #tpu.dot_dimension_numbers<[1], [0], [0], [1], [0, 0, 1, 1], [], []>} : vector<8x32xbf16>, vector<32x32xbf16>, vector<8x32xf32> -> vector<8x32xf32>
    %c0_14 = arith.constant 0 : index
    %c0_15 = arith.constant 0 : index
    %44 = vector.load %arg20[%c0_14, %c0_15] : memref<16x8xbf16, #tpu.memory_space<vmem>>, vector<16x8xbf16>
    %45 = arith.truncf %41 : vector<8x32xf32> to vector<8x32xbf16>
    %cst_16 = arith.constant dense<0.000000e+00> : vector<16x32xf32>
    %46 = tpu.matmul %44, %45, %cst_16 {dimension_numbers = #tpu.dot_dimension_numbers<[1], [0], [0], [1], [0, 0, 1, 1], [], []>} : vector<16x8xbf16>, vector<8x32xbf16>, vector<16x32xf32> -> vector<16x32xf32>
    %c0_17 = arith.constant 0 : index
    %c0_18 = arith.constant 0 : index
    %47 = vector.load %arg21[%c0_17, %c0_18] : memref<16x8xbf16, #tpu.memory_space<vmem>>, vector<16x8xbf16>
    %48 = arith.truncf %43 : vector<8x32xf32> to vector<8x32xbf16>
    %cst_19 = arith.constant dense<0.000000e+00> : vector<16x32xf32>
    %49 = tpu.matmul %47, %48, %cst_19 {dimension_numbers = #tpu.dot_dimension_numbers<[1], [0], [0], [1], [0, 0, 1, 1], [], []>} : vector<16x8xbf16>, vector<8x32xbf16>, vector<16x32xf32> -> vector<16x32xf32>
    %50 = arith.addf %46, %49 : vector<16x32xf32>
    %c0_20 = arith.constant 0 : index
    %c0_21 = arith.constant 0 : index
    %c0_22 = arith.constant 0 : index
    %51 = vector.load %arg16[%c0_20, %c0_21, %c0_22] : memref<1x16x32xf32, #tpu.memory_space<vmem>>, vector<1x16x32xf32>
    %52 = vector.shape_cast %51 : vector<1x16x32xf32> to vector<16x32xf32>
    %53 = arith.addf %50, %52 : vector<16x32xf32>
    %cst_23 = arith.constant dense<0.000000e+00> : vector<16xf32>
    %54 = vector.multi_reduction <add>, %53, %cst_23 [1] : vector<16x32xf32> to vector<16xf32>
    %55 = vector.shape_cast %54 : vector<16xf32> to vector<16x1xf32>
    %cst_24 = arith.constant 3.200000e+01 : f32
    %56 = vector.broadcast %cst_24 : f32 to vector<16x1xf32>
    %57 = arith.divf %55, %56 : vector<16x1xf32>
    %58 = arith.mulf %53, %53 : vector<16x32xf32>
    %cst_25 = arith.constant dense<0.000000e+00> : vector<16xf32>
    %59 = vector.multi_reduction <add>, %58, %cst_25 [1] : vector<16x32xf32> to vector<16xf32>
    %60 = vector.shape_cast %59 : vector<16xf32> to vector<16x1xf32>
    %cst_26 = arith.constant 3.200000e+01 : f32
    %61 = vector.broadcast %cst_26 : f32 to vector<16x1xf32>
    %62 = arith.divf %60, %61 : vector<16x1xf32>
    %63 = arith.mulf %57, %57 : vector<16x1xf32>
    %64 = arith.subf %62, %63 : vector<16x1xf32>
    %65 = vector.broadcast %57 : vector<16x1xf32> to vector<16x32xf32>
    %66 = arith.subf %53, %65 : vector<16x32xf32>
    %cst_27 = arith.constant 9.99999974E-6 : f32
    %67 = vector.broadcast %cst_27 : f32 to vector<16x1xf32>
    %68 = arith.addf %64, %67 : vector<16x1xf32>
    %69 = math.rsqrt %68 : vector<16x1xf32>
    %70 = vector.broadcast %69 : vector<16x1xf32> to vector<16x32xf32>
    %71 = arith.mulf %66, %70 : vector<16x32xf32>
    %72 = vector.broadcast %8 : vector<1x32xf32> to vector<16x32xf32>
    %73 = arith.mulf %71, %72 : vector<16x32xf32>
    %74 = vector.broadcast %9 : vector<1x32xf32> to vector<16x32xf32>
    %75 = arith.addf %73, %74 : vector<16x32xf32>
    %76 = arith.negf %75 : vector<16x32xf32>
    %77 = math.exp %76 : vector<16x32xf32>
    %cst_28 = arith.constant 1.000000e+00 : f32
    %78 = vector.broadcast %cst_28 : f32 to vector<16x32xf32>
    %79 = arith.addf %78, %77 : vector<16x32xf32>
    %80 = arith.divf %78, %79 : vector<16x32xf32>
    %81 = arith.mulf %75, %80 : vector<16x32xf32>
    %82 = arith.truncf %81 : vector<16x32xf32> to vector<16x32xbf16>
    %c0_29 = arith.constant 0 : index
    %c0_30 = arith.constant 0 : index
    %c0_31 = arith.constant 0 : index
    %83 = vector.load %arg13[%c0_29, %c0_30, %c0_31] : memref<1x32x32xbf16, #tpu.memory_space<vmem>>, vector<1x32x32xbf16>
    %84 = vector.shape_cast %83 : vector<1x32x32xbf16> to vector<32x32xbf16>
    %cst_32 = arith.constant dense<0.000000e+00> : vector<16x32xf32>
    %85 = tpu.matmul %82, %84, %cst_32 {dimension_numbers = #tpu.dot_dimension_numbers<[1], [0], [0], [1], [0, 0, 1, 1], [], []>} : vector<16x32xbf16>, vector<32x32xbf16>, vector<16x32xf32> -> vector<16x32xf32>
    %86 = vector.broadcast %10 : vector<1x32xf32> to vector<16x32xf32>
    %87 = arith.addf %85, %86 : vector<16x32xf32>
    %c0_33 = arith.constant 0 : index
    %c0_34 = arith.constant 0 : index
    %88 = vector.load %arg22[%c0_33, %c0_34] : memref<8x16xbf16, #tpu.memory_space<vmem>>, vector<8x16xbf16>
    %89 = arith.truncf %87 : vector<16x32xf32> to vector<16x32xbf16>
    %cst_35 = arith.constant dense<0.000000e+00> : vector<8x32xf32>
    %90 = tpu.matmul %88, %89, %cst_35 {dimension_numbers = #tpu.dot_dimension_numbers<[1], [0], [0], [1], [0, 0, 1, 1], [], []>} : vector<8x16xbf16>, vector<16x32xbf16>, vector<8x32xf32> -> vector<8x32xf32>
    %c0_36 = arith.constant 0 : index
    %c0_37 = arith.constant 0 : index
    %c0_38 = arith.constant 0 : index
    %91 = vector.load %arg14[%c0_36, %c0_37, %c0_38] : memref<1x64x32xbf16, #tpu.memory_space<vmem>>, vector<1x64x32xbf16>
    %92 = vector.shape_cast %91 : vector<1x64x32xbf16> to vector<64x32xbf16>
    %93 = vector.extract_strided_slice %92 {offsets = [0, 0], sizes = [32, 32], strides = [1, 1]} : vector<64x32xbf16> to vector<32x32xbf16>
    %cst_39 = arith.constant dense<0.000000e+00> : vector<8x32xf32>
    %94 = tpu.matmul %37, %93, %cst_39 {dimension_numbers = #tpu.dot_dimension_numbers<[1], [0], [0], [1], [0, 0, 1, 1], [], []>} : vector<8x32xbf16>, vector<32x32xbf16>, vector<8x32xf32> -> vector<8x32xf32>
    %95 = arith.truncf %90 : vector<8x32xf32> to vector<8x32xbf16>
    %96 = vector.extract_strided_slice %92 {offsets = [32, 0], sizes = [32, 32], strides = [1, 1]} : vector<64x32xbf16> to vector<32x32xbf16>
    %cst_40 = arith.constant dense<0.000000e+00> : vector<8x32xf32>
    %97 = tpu.matmul %95, %96, %cst_40 {dimension_numbers = #tpu.dot_dimension_numbers<[1], [0], [0], [1], [0, 0, 1, 1], [], []>} : vector<8x32xbf16>, vector<32x32xbf16>, vector<8x32xf32> -> vector<8x32xf32>
    %98 = arith.addf %94, %97 : vector<8x32xf32>
    %99 = vector.broadcast %11 : vector<1x32xf32> to vector<8x32xf32>
    %100 = arith.addf %98, %99 : vector<8x32xf32>
    %cst_41 = arith.constant dense<0.000000e+00> : vector<8xf32>
    %101 = vector.multi_reduction <add>, %100, %cst_41 [1] : vector<8x32xf32> to vector<8xf32>
    %102 = vector.shape_cast %101 : vector<8xf32> to vector<8x1xf32>
    %cst_42 = arith.constant 3.200000e+01 : f32
    %103 = vector.broadcast %cst_42 : f32 to vector<8x1xf32>
    %104 = arith.divf %102, %103 : vector<8x1xf32>
    %105 = arith.mulf %100, %100 : vector<8x32xf32>
    %cst_43 = arith.constant dense<0.000000e+00> : vector<8xf32>
    %106 = vector.multi_reduction <add>, %105, %cst_43 [1] : vector<8x32xf32> to vector<8xf32>
    %107 = vector.shape_cast %106 : vector<8xf32> to vector<8x1xf32>
    %cst_44 = arith.constant 3.200000e+01 : f32
    %108 = vector.broadcast %cst_44 : f32 to vector<8x1xf32>
    %109 = arith.divf %107, %108 : vector<8x1xf32>
    %110 = arith.mulf %104, %104 : vector<8x1xf32>
    %111 = arith.subf %109, %110 : vector<8x1xf32>
    %112 = vector.broadcast %104 : vector<8x1xf32> to vector<8x32xf32>
    %113 = arith.subf %100, %112 : vector<8x32xf32>
    %cst_45 = arith.constant 9.99999974E-6 : f32
    %114 = vector.broadcast %cst_45 : f32 to vector<8x1xf32>
    %115 = arith.addf %111, %114 : vector<8x1xf32>
    %116 = math.rsqrt %115 : vector<8x1xf32>
    %117 = vector.broadcast %116 : vector<8x1xf32> to vector<8x32xf32>
    %118 = arith.mulf %113, %117 : vector<8x32xf32>
    %119 = vector.broadcast %12 : vector<1x32xf32> to vector<8x32xf32>
    %120 = arith.mulf %118, %119 : vector<8x32xf32>
    %121 = vector.broadcast %13 : vector<1x32xf32> to vector<8x32xf32>
    %122 = arith.addf %120, %121 : vector<8x32xf32>
    %123 = arith.negf %122 : vector<8x32xf32>
    %124 = math.exp %123 : vector<8x32xf32>
    %cst_46 = arith.constant 1.000000e+00 : f32
    %125 = vector.broadcast %cst_46 : f32 to vector<8x32xf32>
    %126 = arith.addf %125, %124 : vector<8x32xf32>
    %127 = arith.divf %125, %126 : vector<8x32xf32>
    %128 = arith.mulf %122, %127 : vector<8x32xf32>
    %129 = arith.truncf %128 : vector<8x32xf32> to vector<8x32xbf16>
    %c0_47 = arith.constant 0 : index
    %c0_48 = arith.constant 0 : index
    %c0_49 = arith.constant 0 : index
    %130 = vector.load %arg15[%c0_47, %c0_48, %c0_49] : memref<1x32x32xbf16, #tpu.memory_space<vmem>>, vector<1x32x32xbf16>
    %131 = vector.shape_cast %130 : vector<1x32x32xbf16> to vector<32x32xbf16>
    %cst_50 = arith.constant dense<0.000000e+00> : vector<8x32xf32>
    %132 = tpu.matmul %129, %131, %cst_50 {dimension_numbers = #tpu.dot_dimension_numbers<[1], [0], [0], [1], [0, 0, 1, 1], [], []>} : vector<8x32xbf16>, vector<32x32xbf16>, vector<8x32xf32> -> vector<8x32xf32>
    %133 = vector.broadcast %14 : vector<1x32xf32> to vector<8x32xf32>
    %134 = arith.addf %132, %133 : vector<8x32xf32>
    %135 = arith.addf %36, %134 : vector<8x32xf32>
    %c0_51 = arith.constant 0 : index
    %c0_52 = arith.constant 0 : index
    %136 = vector.load %arg19[%c0_51, %c0_52] : memref<8x32xf32, #tpu.memory_space<vmem>>, vector<8x32xf32>
    tpu.vector_store %arg19[%c0_51, %c0_52], %135 {strides = array<i32>} : memref<8x32xf32, #tpu.memory_space<vmem>>, vector<8x32xf32>,
    %c1_i32 = arith.constant 1 : i32
    %137 = arith.cmpi eq, %arg0, %c1_i32 : i32
    %138 = arith.extui %137 : i1 to i32
    %c0_i32_53 = arith.constant 0 : i32
    %139 = arith.cmpi ne, %138, %c0_i32_53 : i32
    scf.if %139 {
      %140 = arith.truncf %135 : vector<8x32xf32> to vector<8x32xbf16>
      %c0_54 = arith.constant 0 : index
      %c0_55 = arith.constant 0 : index
      %141 = vector.load %arg8[%c0_54, %c0_55] : memref<32x32xbf16, #tpu.memory_space<vmem>>, vector<32x32xbf16>
      %cst_56 = arith.constant dense<0.000000e+00> : vector<8x32xf32>
      %142 = tpu.matmul %140, %141, %cst_56 {dimension_numbers = #tpu.dot_dimension_numbers<[1], [0], [0], [1], [0, 0, 1, 1], [], []>} : vector<8x32xbf16>, vector<32x32xbf16>, vector<8x32xf32> -> vector<8x32xf32>
      %c0_57 = arith.constant 0 : index
      %c0_58 = arith.constant 0 : index
      %143 = vector.load %arg9[%c0_57, %c0_58] : memref<1x32xf32, #tpu.memory_space<vmem>>, vector<1x32xf32>
      %144 = vector.broadcast %143 : vector<1x32xf32> to vector<8x32xf32>
      %145 = arith.addf %142, %144 : vector<8x32xf32>
      %146 = arith.negf %145 : vector<8x32xf32>
      %147 = math.exp %146 : vector<8x32xf32>
      %cst_59 = arith.constant 1.000000e+00 : f32
      %148 = vector.broadcast %cst_59 : f32 to vector<8x32xf32>
      %149 = arith.addf %148, %147 : vector<8x32xf32>
      %150 = arith.divf %148, %149 : vector<8x32xf32>
      %151 = arith.mulf %145, %150 : vector<8x32xf32>
      %152 = arith.truncf %151 : vector<8x32xf32> to vector<8x32xbf16>
      %c0_60 = arith.constant 0 : index
      %c0_61 = arith.constant 0 : index
      %153 = vector.load %arg10[%c0_60, %c0_61] : memref<32x128xbf16, #tpu.memory_space<vmem>>, vector<32x128xbf16>
      %cst_62 = arith.constant dense<0.000000e+00> : vector<8x128xf32>
      %154 = tpu.matmul %152, %153, %cst_62 {dimension_numbers = #tpu.dot_dimension_numbers<[1], [0], [0], [1], [0, 0, 1, 1], [], []>} : vector<8x32xbf16>, vector<32x128xbf16>, vector<8x128xf32> -> vector<8x128xf32>
      %c0_63 = arith.constant 0 : index
      %c0_64 = arith.constant 0 : index
      %155 = vector.load %arg11[%c0_63, %c0_64] : memref<1x128xf32, #tpu.memory_space<vmem>>, vector<1x128xf32>
      %156 = vector.broadcast %155 : vector<1x128xf32> to vector<8x128xf32>
      %157 = arith.addf %154, %156 : vector<8x128xf32>
      %c0_65 = arith.constant 0 : index
      %c0_66 = arith.constant 0 : index
      %158 = vector.load %arg18[%c0_65, %c0_66] : memref<8x128xf32, #tpu.memory_space<vmem>>, vector<8x128xf32>
      tpu.vector_store %arg18[%c0_65, %c0_66], %157 {strides = array<i32>} : memref<8x128xf32, #tpu.memory_space<vmem>>, vector<8x128xf32>,
    } else {
    }
    return
  }
  func.func @transform_0(%arg0: i32) -> (i32, i32) {
    %c0_i32 = arith.constant 0 : i32
    %c0_i32_0 = arith.constant 0 : i32
    %c0_i32_1 = arith.constant 0 : i32
    return %c0_i32, %c0_i32_0 : i32, i32
  }
  func.func @transform_1(%arg0: i32) -> (i32, i32) {
    %c0_i32 = arith.constant 0 : i32
    %c0_i32_0 = arith.constant 0 : i32
    %c0_i32_1 = arith.constant 0 : i32
    return %c0_i32, %c0_i32_0 : i32, i32
  }
  func.func @transform_2(%arg0: i32) -> (i32, i32) {
    %c0_i32 = arith.constant 0 : i32
    %c0_i32_0 = arith.constant 0 : i32
    %c0_i32_1 = arith.constant 0 : i32
    return %c0_i32, %c0_i32_0 : i32, i32
  }
  func.func @transform_3(%arg0: i32) -> (i32, i32) {
    %c0_i32 = arith.constant 0 : i32
    %c0_i32_0 = arith.constant 0 : i32
    %c0_i32_1 = arith.constant 0 : i32
    return %c0_i32, %c0_i32_0 : i32, i32
  }
  func.func @transform_4(%arg0: i32) -> (i32, i32) {
    %c0_i32 = arith.constant 0 : i32
    %c0_i32_0 = arith.constant 0 : i32
    %c0_i32_1 = arith.constant 0 : i32
    return %c0_i32, %c0_i32_0 : i32, i32
  }
  func.func @transform_5(%arg0: i32) -> (i32, i32) {
    %c0_i32 = arith.constant 0 : i32
    %c0_i32_0 = arith.constant 0 : i32
    %c0_i32_1 = arith.constant 0 : i32
    return %c0_i32, %c0_i32_0 : i32, i32
  }
  func.func @transform_6(%arg0: i32) -> (i32, i32) {
    %c0_i32 = arith.constant 0 : i32
    %c0_i32_0 = arith.constant 0 : i32
    %c0_i32_1 = arith.constant 0 : i32
    return %c0_i32, %c0_i32_0 : i32, i32
  }
  func.func @transform_7(%arg0: i32) -> (i32, i32) {
    %c0_i32 = arith.constant 0 : i32
    %c0_i32_0 = arith.constant 0 : i32
    %c0_i32_1 = arith.constant 0 : i32
    return %c0_i32, %c0_i32_0 : i32, i32
  }
  func.func @transform_8(%arg0: i32) -> (i32, i32) {
    %c0_i32 = arith.constant 0 : i32
    %c0_i32_0 = arith.constant 0 : i32
    %c0_i32_1 = arith.constant 0 : i32
    return %c0_i32, %c0_i32_0 : i32, i32
  }
  func.func @transform_9(%arg0: i32) -> (i32, i32) {
    %c0_i32 = arith.constant 0 : i32
    %c0_i32_0 = arith.constant 0 : i32
    %c0_i32_1 = arith.constant 0 : i32
    return %c0_i32, %c0_i32_0 : i32, i32
  }
  func.func @transform_10(%arg0: i32) -> (i32, i32) {
    %c0_i32 = arith.constant 0 : i32
    %c0_i32_0 = arith.constant 0 : i32
    %c0_i32_1 = arith.constant 0 : i32
    return %c0_i32, %c0_i32_0 : i32, i32
  }
  func.func @transform_11(%arg0: i32) -> (i32, i32, i32) {
    %c0_i32 = arith.constant 0 : i32
    %c0_i32_0 = arith.constant 0 : i32
    %c0_i32_1 = arith.constant 0 : i32
    return %arg0, %c0_i32, %c0_i32_0 : i32, i32, i32
  }
  func.func @transform_12(%arg0: i32) -> (i32, i32, i32) {
    %c0_i32 = arith.constant 0 : i32
    %c0_i32_0 = arith.constant 0 : i32
    %c0_i32_1 = arith.constant 0 : i32
    return %arg0, %c0_i32, %c0_i32_0 : i32, i32, i32
  }
  func.func @transform_13(%arg0: i32) -> (i32, i32, i32) {
    %c0_i32 = arith.constant 0 : i32
    %c0_i32_0 = arith.constant 0 : i32
    %c0_i32_1 = arith.constant 0 : i32
    return %arg0, %c0_i32, %c0_i32_0 : i32, i32, i32
  }
  func.func @transform_14(%arg0: i32) -> (i32, i32, i32) {
    %c0_i32 = arith.constant 0 : i32
    %c0_i32_0 = arith.constant 0 : i32
    %c0_i32_1 = arith.constant 0 : i32
    return %arg0, %c0_i32, %c0_i32_0 : i32, i32, i32
  }
  func.func @transform_15(%arg0: i32) -> (i32, i32, i32) {
    %c0_i32 = arith.constant 0 : i32
    %c0_i32_0 = arith.constant 0 : i32
    %c0_i32_1 = arith.constant 0 : i32
    return %arg0, %c0_i32, %c0_i32_0 : i32, i32, i32
  }
  func.func @transform_16(%arg0: i32) -> (i32, i32, i32) {
    %c0_i32 = arith.constant 0 : i32
    %c0_i32_0 = arith.constant 0 : i32
    %c0_i32_1 = arith.constant 0 : i32
    return %arg0, %c0_i32, %c0_i32_0 : i32, i32, i32
  }
  func.func @transform_17(%arg0: i32) -> (i32, i32) {
    %c0_i32 = arith.constant 0 : i32
    %c0_i32_0 = arith.constant 0 : i32
    %c0_i32_1 = arith.constant 0 : i32
    return %c0_i32, %c0_i32_0 : i32, i32
  }
}

</mosaic_0001>

<bundles_post_ra>
// kernel: tpu_custom_call.1
= control target key start
LH: loop header
LB: loop body
LE: loop exit
PB: predicated region body
PF: predicated region fallthrough
CT: control target
= control target key end

     0   :  { %s2647_s0 = inlined_call_operand.hbm [shape: bf16[8,16], index: 0, kind: input, shape index: {}]   ;;  %s2648_s1 = inlined_call_operand.vmem [shape: s32[16,2], index: 1, kind: input, shape index: {}]   ;;  %s2649_s2 = inlined_call_operand.vmem [shape: s32[1,16], index: 2, kind: input, shape index: {}]   ;;  %s2650_s3 = inlined_call_operand.vmem [shape: bf16[16,32], index: 3, kind: input, shape index: {}]   ;;  %s2651_s4 = inlined_call_operand.vmem [shape: f32[1,32], index: 4, kind: input, shape index: {}]   ;;  %s2652_s5 = inlined_call_operand.vmem [shape: bf16[32,32], index: 5, kind: input, shape index: {}]   ;;  %s2653_s6 = inlined_call_operand.vmem [shape: f32[1,32], index: 6, kind: input, shape index: {}]   ;;  %s2654_s7 = inlined_call_operand.vmem [shape: bf16[32,32], index: 7, kind: input, shape index: {}]   ;;  %s2655_s8 = inlined_call_operand.hbm [shape: f32[1,32], index: 8, kind: input, shape index: {}]   ;;  %s2656_s9 = inlined_call_operand.vmem [shape: bf16[32,128], index: 9, kind: input, shape index: {}]   ;;  %s2657_s10 = inlined_call_operand.hbm [shape: f32[1,128], index: 10, kind: input, shape index: {}]   ;;  %s2658_s11 = inlined_call_operand.vmem [shape: bf16[2,64,32], index: 11, kind: input, shape index: {}]   ;;  %s2659_s12 = inlined_call_operand.vmem [shape: bf16[2,32,32], index: 12, kind: input, shape index: {}]   ;;  %s2660_s13 = inlined_call_operand.vmem [shape: bf16[2,64,32], index: 13, kind: input, shape index: {}]   ;;  %s2661_s14 = inlined_call_operand.vmem [shape: bf16[2,32,32], index: 14, kind: input, shape index: {}]   ;;  %s2662_s15 = inlined_call_operand.vmem [shape: f32[2,16,32], index: 15, kind: input, shape index: {}]   ;;  %s2663_s16 = inlined_call_operand.vmem [shape: f32[2,16,32], index: 16, kind: input, shape index: {}]   ;;  %s2664_s17 = inlined_call_operand.hbm [shape: f32[8,128], index: 17, kind: output, shape index: {}]  }
   0x1   :  { %2672 = sst [smem:[#allocation17_spill]] %s2647_s0 }
   0x2   :  { %2673 = sst [smem:[#allocation18_spill]] %s2648_s1 }
   0x3   :  { %2674 = sst [smem:[#allocation19_spill]] %s2655_s8 }
   0x4   :  { %2675 = sst [smem:[#allocation20_spill]] %s2656_s9 }
   0x5   :  { %2676 = sst [smem:[#allocation21_spill]] %s2657_s10 }
   0x6   :  { %2677 = sst [smem:[#allocation22_spill]] %s2664_s17 }
   0x7   :  { %22 = vsyncpa [#allocation7], 0 }
   0x8   :  { %23 = vsyncpa [#allocation10], 0 }
   0x9   :  { %24 = vsyncpa [#allocation8], 0  ;;  %s2327_s24 = smov 0  }
   0xa LB: > { %2678 = sst [smem:[#allocation16_spill]] %s2223_s24  ;;  %s2333_s25 = sadd.s32 4294967295, %s2223_s24   ;;  %s2223_s24 = sphi %s2327_s24, %s30_s24  }
   0xb   : > { %p1780_p0 = scmp.ge.s32.totalorder %s2223_s24, 1  ;;  %p443_p1 = scmp.lt.s32.totalorder %s2223_s24, 3 }
   0xc   : > { %p2667_p3 = scmp.eq.s32.totalorder %s2333_s25, 0  ;;  %s2225_s27 = smov [#allocation9]  }
   0xd   : > { %p2339_p4 = pnand %p1780_p0, %p443_p1  ;;  %s488_s28 = sshll.u32 %s2225_s27, 4  ;;  %s489_s28 = int_to_ptr.vmem [resolvable:$true] %s488_s28 }
   0xe   : > { %s2226_s29 = smov [#allocation6]   ;;  %s2227_s30 = smov [#allocation11]  }
   0xf   : > { %s2679_s26 = scalar_select %p2339_p4, 1, 0 }
  0x10   : > { %p2007_p5 = pneg %p2339_p4  ;;  %s456_s0 = sshll.u32 %s2226_s29, 4  ;;  %s2351_s0 = int_to_ptr.vmem [resolvable:$true] %s456_s0 }
  0x11   : > { %s502_s18 = sshll.u32 %s2227_s30, 4  ;;  %s2681_s8 = sld [smem:[#allocation19_spill]]  ;;  %s2353_s18 = int_to_ptr.vmem [resolvable:$true] %s502_s18 }
  0x12   : > { %p2347_p6 = pnand %p2667_p3, %p2007_p5 }
  0x14   : > { %p2363_p8 = pneg %p2347_p6 }
  0x17   : > { %s2095_s21 = scalar_lea.hbm %s2681_s8, 16 }
  0x18   : > { %p2096_p7 = scmp.ne.s32.totalorder %s2681_s8, %s2095_s21  ;;  %p2102_p11 = scmp.lt.u32.totalorder %s2095_s21, %s2681_s8 }
  0x1a   : > { %p2098_p9 = pnand %p2363_p8, %p2096_p7 }
  0x1c   : > { %p2099_p10 = pneg %p2098_p9 }
  0x1e   : > { %p2104_p12 = pnand %p2102_p11, %p2099_p10 }
  0x20   : > { %2107 = shalt.err (!%p2104_p12)
}
  0x21   : > { %s2108_s1 = scalar_lea.vmem %s489_s28, 16  ;;  %s2115_s20 = scalar_lea.vmem %s489_s28, 32 }
  0x22   : > { %p2109_p13 = scmp.ne.s32.totalorder %s489_s28, %s2108_s1  ;;  %p2116_p5 = scmp.lt.s32.totalorder %s489_s28, %s489_s28 }
  0x23   : > { %p2117_p2 = scmp.lt.s32.totalorder %s2115_s20, %s2108_s1 }
  0x24   : > { %p2111_p0 = pnand %p2109_p13, %p2363_p8 }
  0x25   : > { %p2118_p3 = por %p2117_p2, %p2116_p5 }
  0x26   : > { %p2112_p1 = pneg %p2111_p0 }
  0x28   : > { %p2119_p4 = pnand %p2118_p3, %p2112_p1 }
  0x2a   : > { %2122 = shalt.err (!%p2119_p4)
}
  0x2b   : > { %2013 = dma.hbm_to_vmem [thread:$0]  (!%p2347_p6), %s2681_s8, 16, %s489_s28, [#allocation10]  }
  0x2c   : > { %s2683_s30 = sld [smem:[#allocation17_spill]] }
  0x32   : > { %s2123_s24 = scalar_lea.hbm %s2683_s30, 64 }
  0x33   : > { %p2124_p7 = scmp.ne.s32.totalorder %s2683_s30, %s2123_s24  ;;  %p2130_p3 = scmp.lt.u32.totalorder %s2123_s24, %s2683_s30 }
  0x35   : > { %p2126_p9 = pnand %p2124_p7, %p2363_p8 }
  0x37   : > { %p2127_p2 = pneg %p2126_p9 }
  0x39   : > { %p2132_p4 = pnand %p2130_p3, %p2127_p2 }
  0x3b   : > { %2135 = shalt.err (!%p2132_p4)
}
  0x3c   : > { %s2136_s28 = scalar_lea.vmem %s2351_s0, 64  ;;  %p2144_p13 = scmp.lt.s32.totalorder %s2351_s0, %s2351_s0 }
  0x3d   : > { %p2137_p10 = scmp.ne.s32.totalorder %s2351_s0, %s2136_s28  ;;  %p2145_p0 = scmp.lt.s32.totalorder %s2136_s28, %s2136_s28 }
  0x3f   : > { %p2139_p11 = pnand %p2137_p10, %p2363_p8  ;;  %p2146_p1 = por %p2145_p0, %p2144_p13 }
  0x41   : > { %p2140_p12 = pneg %p2139_p11 }
  0x43   : > { %p2147_p5 = pnand %p2146_p1, %p2140_p12 }
  0x45   : > { %2150 = shalt.err (!%p2147_p5)
}
  0x46   : > { %2010 = dma.hbm_to_vmem [thread:$0]  (!%p2347_p6), %s2683_s30, 64, %s2351_s0, [#allocation7]  }
  0x47   : > { %s2684_s10 = sld [smem:[#allocation21_spill]] }
  0x4d   : > { %s2151_s23 = scalar_lea.hbm %s2684_s10, 16 }
  0x4e   : > { %p2152_p7 = scmp.ne.s32.totalorder %s2684_s10, %s2151_s23  ;;  %p2158_p3 = scmp.lt.u32.totalorder %s2151_s23, %s2684_s10 }
  0x50   : > { %p2154_p9 = pnand %p2152_p7, %p2363_p8 }
  0x52   : > { %p2155_p2 = pneg %p2154_p9 }
  0x54   : > { %p2160_p4 = pnand %p2158_p3, %p2155_p2 }
  0x56   : > { %2163 = shalt.err (!%p2160_p4)
}
  0x57   : > { %s2164_s0 = scalar_lea.vmem %s2353_s18, 16  ;;  %s2171_s28 = scalar_lea.vmem %s2353_s18, 32 }
  0x58   : > { %p2165_p10 = scmp.ne.s32.totalorder %s2353_s18, %s2164_s0  ;;  %p2172_p13 = scmp.lt.s32.totalorder %s2353_s18, %s2353_s18 }
  0x59   : > { %p2173_p0 = scmp.lt.s32.totalorder %s2171_s28, %s2164_s0 }
  0x5a   : > { %p2167_p11 = pnand %p2165_p10, %p2363_p8 }
  0x5b   : > { %p2174_p1 = por %p2173_p0, %p2172_p13 }
  0x5c   : > { %p2168_p12 = pneg %p2167_p11 }
  0x5e   : > { %p2175_p5 = pnand %p2174_p1, %p2168_p12 }
  0x60   : > { %2178 = shalt.err (!%p2175_p5)
}
  0x61   : > { %2016 = dma.hbm_to_vmem [thread:$0]  (!%p2347_p6), %s2684_s10, 16, %s2353_s18, [#allocation10]  }
  0x62   : > { %p2685_p7 = scmp.ne.s32.totalorder %s2679_s26, 0 }
  0x63   : > { %p2686_p8 = scmp.eq.s32.totalorder (!%p2685_p7), %s2333_s25, 0 }
  0x64   : > { %563 = sbr.rel (%p2685_p7) target bundleno = 2951 (0xb87), region = 88 }
  0x6b   : > { %2210 = dma.done.wait (%p2686_p8), [#allocation7], 64   ;;  %p2687_p9 = pmov %p2686_p8 }
  0x6c   : > { %p2688_p2 = pmov %p2686_p8 }
  0x6d   : > { %2212 = vsyncadd (%p2687_p9), [#allocation7], 4294967232 }
  0x6e   : > { %2214 = dma.done.wait (%p2688_p2), [#allocation10], 32   ;;  %p2689_p3 = pmov %p2688_p2 }
  0x6f   : > { %p643_p4 = scmp.lt.s32.totalorder %s2333_s25, 1  ;;  %p2690_p6 = scmp.ne.s32.totalorder %s2333_s25, 0 }
  0x70   : > { %2216 = vsyncadd (%p2689_p3), [#allocation10], 4294967264  ;;  %v2048_v0 = vld [vmem:[%s2650_s3] sm:$0xff] (!%p2690_p6)   ;;  %v2228_v1 = vmov (!%p2690_p6), 0.0   ;;  %v678_v2 = vld [vmem:[#allocation6] sm:$0xf] (!%p2690_p6)  ;;  %v816_v6 = vlaneseq (!%p2690_p6) }
  0x71   : > { %s644_s19 = scalar_select %p643_p4, %s2333_s25, 1 }
  0x72   : > { %677 = sbr.rel (%p2690_p6) target bundleno = 577 (0x241), region = 104  ;;  %1895 = vmatprep.subr.bf16.mxu0 (!%p2690_p6), %v2228_v1  ;;  %vm694_vm0 = vcmask (!%p2690_p6), 130048   ;;  %1901 = vmatprep.subr.bf16.mxu1 (!%p2690_p6), %v2228_v1  ;;  %vm2229_vm1 = vmmov (!%p2690_p6), 0   ;;  %v2049_v3 = vld [vmem:[%s2652_s5] sm:$0xff] (!%p2690_p6)   ;;  %v2050_v4 = vld [vmem:[%s2652_s5 + $0x8] sm:$0xff] (!%p2690_p6)   ;;  %s2691_s9 = sld [smem:[#allocation18_spill]] (!%p2690_p6) }
  0x73   : > { %s1854_s18 = sshll.u32 %s644_s19, 5  ;;  %s1855_s27 = sshll.u32 %s644_s19, 4  ;;  %1896 = vmatpush3.bf16.msra.mxu0 (!%p2690_p6), %v2048_v0  ;;  %1897 = vmatprep.mubr.msk.bf16.mxu0 (!%p2690_p6), %vm2229_vm1, %v2228_v1  ;;  %v2230_v7 = vmov (!%p2690_p6), 1   ;;  %v2231_v8 = vmov (!%p2690_p6), 0   ;;  %v1814_v9 = vld [vmem:[%s2649_s2] ss:$0 sm:$0xff] (!%p2690_p6) }
  0x74   : > { %s2441_s22 = scalar_lea.vmem %s2658_s11, %s1854_s18  ;;  %s2446_s29 = scalar_lea.vmem %s2659_s12, %s1855_s27  ;;  %1905 = vmatprep.mubr.msk.bf16.mxu1 (!%p2690_p6), %vm2229_vm1, %v2228_v1  ;;  %1902 = vmatpush3.bf16.msra.mxu1 (!%p2690_p6), %v2049_v3  ;;  %v848_v10 = vshrl.u32 (!%p2690_p6), %v816_v6, 7  ;;  %vm858_vm3 = vcmask (!%p2690_p6), 125952   ;;  %v1802_v14 = vld [vmem:[%s2651_s4] ss:$0 sm:$0xff] (!%p2690_p6)  ;;  %vm769_vm4 = vcmask (!%p2690_p6), 261120   ;;  %v817_v26 = vand.u32 (!%p2690_p6), 127, %v816_v6 }
  0x75   : > { %s2451_s0 = scalar_lea.vmem %s2660_s13, %s1854_s18  ;;  %s2456_s17 = scalar_lea.vmem %s2661_s14, %s1855_s27  ;;  %1903 = vmatprep.subr.bf16.mxu1 (!%p2690_p6), %v2228_v1  ;;  %2046 = vset.pattern.permute.xlu1 (!%p2690_p6), %v2230_v7  ;;  %vm831_vm9 = vcmask (!%p2690_p6), 64512   ;;  %v1806_v37 = vld [vmem:[%s2653_s6] ss:$0 sm:$0xff] (!%p2690_p6) }
  0x76   : > { %s2461_s26 = scalar_lea.vmem %s2662_s15, %s1855_s27  ;;  %s2466_s23 = scalar_lea.vmem %s2663_s16, %s1855_s27  ;;  %1898 = vmatmul.mubr.msk.bf16.vlgmr.msra.gmra.mrb[0].mxu0 (!%p2690_p6), %vm694_vm0, %v678_v2  ;;  %2045 = vset.pattern.permute.xlu0 (!%p2690_p6), %v2231_v8  ;;  %vm854_vm2 = vcmp.eq.s32.totalorder (!%p2690_p6), %v1814_v9, %v848_v10 }
  0x77   : > { %v1815_v12 = vsel (!%p2690_p6), %vm854_vm2, 1.0, %v2228_v1 }
  0x78   : > { %1904 = vmatpush3.bf16.msra.mxu1 (!%p2690_p6), %v2050_v4  ;;  %v814_v5 = vld [vmem:[%s2691_s9] sm:$0xff] (!%p2690_p6)  ;;  %v815_v11 = vld [vmem:[%s2691_s9 + $0x8] sm:$0xff] (!%p2690_p6)  ;;  %v857_v13 = vpack.c.bf16 (!%p2690_p6), %v1815_v12, %v1815_v12 }
  0x79   : > { %834 = vperm.xlu1 %2046, %v814_v5   ;;  %819 = vperm.xlu0 %2045, %v814_v5  }
  0x7a   : > { %859 = vst.msk [vmem:[#allocation5] sm:$0xf] %vm858_vm3, %v857_v13 }
  0x7d   : > { %837 = vperm.xlu1 %2046, %v815_v11   ;;  %822 = vperm.xlu0 %2045, %v815_v11  }
  0x81   : > { %2047 = vset.pattern.permute.xlu0 %v2230_v7 }
  0xf8   : > { %v835_v27 = vpop.permute.xlu1 %834  ;;  %v820_v28 = vpop.permute.xlu0 %819 }
  0xf9   : > { %vm839_vm5 = vcmp.eq.s32.totalorder %v835_v27, %v817_v26  ;;  %vm824_vm6 = vcmp.eq.s32.totalorder %v820_v28, %v817_v26 }
  0xfa   : > { %v1812_v29 = vsel %vm839_vm5, 1.0, %v2228_v1  ;;  %v1810_v30 = vsel %vm824_vm6, 1.0, %v2228_v1 }
  0xfc   : > { %v838_v31 = vpop.permute.xlu1 %837  ;;  %v823_v32 = vpop.permute.xlu0 %822 }
  0xfd   : > { %vm840_vm7 = vcmp.eq.s32.totalorder %v838_v31, %v817_v26  ;;  %vm825_vm8 = vcmp.eq.s32.totalorder %v823_v32, %v817_v26 }
  0xfe   : > { %v1813_v33 = vsel %vm840_vm7, 1.0, %v2228_v1  ;;  %v1811_v34 = vsel %vm825_vm8, 1.0, %v2228_v1 }
  0xff   : > { %v845_v35 = vpack.c.bf16 %v1813_v33, %v1812_v29  ;;  %v830_v36 = vpack.c.bf16 %v1811_v34, %v1810_v30 }
 0x101   : > { %846 = vst.msk [vmem:[#allocation4] sm:$0xff] %vm831_vm9, %v845_v35  ;;  %832 = vst.msk [vmem:[#allocation3] sm:$0xff] %vm831_vm9, %v830_v36 }
 0x149   : > { %v732_v15 = vpop.f32.mrb[0].mxu0 }
 0x14a   : > { %v733_v16 = vadd.f32 %v1802_v14, %v732_v15  ;;  %v1899_v17 = vpop.f32.mrb[1].mxu0 }
 0x14b   : > { %v735_v18 = vpop.f32.mrb[2].mxu0 }
 0x14c   : > { %v1805_v19 = vmul.f32 -1.442695, %v733_v16  ;;  %v1900_v20 = vpop.f32.mrb[3].mxu0 }
 0x14e   : > { %2051 = vpow2.f32 %v1805_v19 }
 0x158   : > { %v2052_v21 = vpop.eup %2051 }
 0x159   : > { %v741_v22 = vadd.f32 1.0, %v2052_v21 }
 0x15b   : > { %2053 = vrcp.f32 %v741_v22 }
 0x165   : > { %v2054_v23 = vpop.eup %2053 }
 0x166   : > { %v744_v24 = vmul.f32 %v2054_v23, %v733_v16 }
 0x168   : > { %v745_v25 = vpack.c.bf16 %v744_v24, %v744_v24 }
 0x16a   : > { %1906 = vmatmul.mubr.msk.bf16.vlgmr.msra.gmra.mrb[0].mxu1 %vm769_vm4, %v745_v25 }
 0x23d   : > { %v807_v38 = vpop.f32.mrb[0].mxu1 }
 0x23e   : > { %v808_v39 = vadd.f32 %v1806_v37, %v807_v38  ;;  %v1907_v40 = vpop.f32.mrb[1].mxu1 }
 0x23f   : > { %v810_v41 = vpop.f32.mrb[2].mxu1 }
 0x240   : > { %813 = vst.msk [vmem:[#allocation2] sm:$0xff] %vm769_vm4, %v808_v39  ;;  %v1908_v42 = vpop.f32.mrb[3].mxu1 }
 0x241 PF: > { %vm863_vm10 = vcmask 261120   ;;  %v2055_v47 = vld [vmem:[%s2441_s22] sm:$0xff]   ;;  %v2056_v48 = vld [vmem:[%s2441_s22 + $0x10] sm:$0xff]   ;;  %v2232_v49 = vmov 0.0   ;;  %v2057_v50 = vld [vmem:[%s2441_s22 + $0x8] sm:$0xff]   ;;  %vm2233_vm11 = vmmov 0   ;;  %v880_v58 = vlaneseq }
 0x242   : > { %1909 = vmatprep.subr.bf16.mxu0 %v2232_v49  ;;  %1917 = vmatprep.subr.bf16.mxu1 %v2232_v49  ;;  %v2058_v51 = vld [vmem:[%s2441_s22 + $0x18] sm:$0xff]   ;;  %v2526_v62 = vld [vmem:[%s2466_s23] sm:$0xff]  ;;  %vm1014_vm12 = vcmask 1043456   ;;  %v1008_v20 = vld [vmem:[#allocation4] sm:$0xff]  ;;  %vm1010_vm13 = vcmask 64512   ;;  %vm1233_vm14 = vcmask 130048  }
 0x243   : > { %1910 = vmatpush3.bf16.msra.mxu0 %v2055_v47  ;;  %1918 = vmatpush3.bf16.msra.mxu1 %v2056_v48  ;;  %v2522_v60 = vshrl.u32 %v880_v58, 7  ;;  %v1006_v21 = vld [vmem:[#allocation3] sm:$0xff]  ;;  %v1106_v24 = vld [vmem:[%s2461_s26] sm:$0xff]  ;;  %p1840_p10 = scmp.ne.s32.totalorder %s2333_s25, 1 }
 0x244   : > { %1911 = vmatprep.subr.bf16.mxu0 %v2232_v49  ;;  %1919 = vmatprep.subr.bf16.mxu1 %v2232_v49  ;;  %v1107_v30 = vld [vmem:[%s2461_s26 + $0x8] sm:$0xff]  ;;  %v2059_v42 = vld [vmem:[%s2446_s29] sm:$0xff]   ;;  %vm2235_vm15 = vmmov (!%p1840_p10), 0   ;;  %s2692_s20 = sld [smem:[#allocation20_spill]] (!%p1840_p10) }
 0x245   : > { %1913 = vmatprep.mubr.msk.bf16.mxu0 %vm2233_vm11, %v2232_v49  ;;  %1921 = vmatprep.mubr.msk.bf16.mxu1 %vm2233_vm11, %v2232_v49  ;;  %v882_v61 = vsub.s32 0, %v2522_v60  ;;  %v887_v63 = vsub.s32 1, %v2522_v60 }
 0x247   : > { %v860_v43 = vld [vmem:[#allocation2] sm:$0xff]  ;;  %1912 = vmatpush3.bf16.msra.mxu0 %v2057_v50  ;;  %1920 = vmatpush3.bf16.msra.mxu1 %v2058_v51  ;;  %v883_v1 = vrot.slane %v2526_v62, %v882_v61  ;;  %v888_v4 = vrot.slane %v2526_v62, %v887_v63 }
 0x248   : > { %v864_v44 = vsel %vm863_vm10, %v860_v43, 0.0  ;;  %v869_v45 = vmul.f32 %v860_v43, %v860_v43  ;;  %1925 = vmatprep.subr.bf16.mxu0 %v2232_v49  ;;  %1931 = vmatprep.subr.bf16.mxu1 %v2232_v49 }
 0x249   : > { %865 = vadd.xlane.f32.xlu0 %v864_v44 }
 0x24a   : > { %v870_v46 = vsel %vm863_vm10, %v869_v45, 0.0 }
 0x24d   : > { %871 = vadd.xlane.f32.xlu0 %v870_v46 }
 0x2d6   : > { %v866_v52 = vpop.xlane.xlu0 %865 }
 0x2d7   : > { %v868_v53 = vmul.f32 0.03125, %v866_v52 }
 0x2d9   : > { %v874_v55 = vmul.f32 %v868_v53, %v868_v53  ;;  %v876_v0 = vsub.f32 %v860_v43, %v868_v53  ;;  %v2060_v43 = vld [vmem:[%s2446_s29 + $0x8] sm:$0xff]  }
 0x2da   : > { %v872_v54 = vpop.xlane.xlu0 %871 }
 0x2db   : > { %v873_v56 = vmul.f32 0.03125, %v872_v54 }
 0x2dd   : > { %v875_v57 = vsub.f32 %v873_v56, %v874_v55 }
 0x2df   : > { %v877_v59 = vadd.f32 1e-05, %v875_v57 }
 0x2e1   : > { %2067 = vrsqrt.f32 %v877_v59  ;;  %v1142_v59 = vsub.s32 3, %v2522_v60 }
 0x2eb   : > { %v2068_v2 = vpop.eup %2067 }
 0x2ec   : > { %v879_v3 = vmul.f32 %v2068_v2, %v876_v0  ;;  %v1148_v0 = vsub.s32 4, %v2522_v60  ;;  %v1143_v2 = vrot.slane %v2526_v62, %v1142_v59 }
 0x2ee   : > { %v884_v5 = vmul.f32 %v883_v1, %v879_v3 }
 0x2f0   : > { %v2535_v6 = vadd.f32 %v888_v4, %v884_v5  ;;  %v1149_v5 = vrot.slane %v2526_v62, %v1148_v0  ;;  %v2065_v0 = vld [vmem:[%s2456_s17] sm:$0xff]  }
 0x2f2   : > { %v2539_v7 = vpack.c.bf16 %v2535_v6, %v2535_v6 }
 0x2f4   : > { %1914 = vmatmul.mubr.msk.bf16.vlgmr.msra.gmra.mrb[0].mxu0 %vm863_vm10, %v2539_v7  ;;  %1922 = vmatmul.mubr.msk.bf16.vlgmr.msra.gmra.mrb[0].mxu1 %vm863_vm10, %v2539_v7 }
 0x2f5   : > { %1927 = vmatprep.mubr.msk.bf16.mxu0 %vm2233_vm11, %v2232_v49  ;;  %1933 = vmatprep.mubr.msk.bf16.mxu1 %vm2233_vm11, %v2232_v49 }
 0x3c7   : > { %v948_v8 = vpop.f32.mrb[0].mxu0  ;;  %v1000_v9 = vpop.f32.mrb[0].mxu1 }
 0x3c8   : > { %v1007_v10 = vpack.c.bf16 %v948_v8, %v948_v8  ;;  %v1009_v11 = vpack.c.bf16 %v1000_v9, %v1000_v9  ;;  %v1915_v12 = vpop.f32.mrb[1].mxu0  ;;  %v1923_v13 = vpop.f32.mrb[1].mxu1 }
 0x3c9   : > { %v951_v14 = vpop.f32.mrb[2].mxu0  ;;  %v1003_v15 = vpop.f32.mrb[2].mxu1 }
 0x3ca   : > { %v1063_v16 = vsel %vm1014_vm12, %v1007_v10, 0  ;;  %v1016_v17 = vsel %vm1014_vm12, %v1009_v11, 0  ;;  %v1916_v18 = vpop.f32.mrb[3].mxu0  ;;  %v1924_v19 = vpop.f32.mrb[3].mxu1 }
 0x3cb   : > { %1926 = vmatpush3.bf16.msra.mxu0 %v1016_v17  ;;  %1932 = vmatpush3.bf16.msra.mxu1 %v1063_v16 }
 0x3cc   : > { %1937 = vmatprep.subr.bf16.mxu0 %v2232_v49  ;;  %1945 = vmatprep.subr.bf16.mxu1 %v2232_v49 }
 0x3ce   : > { %1928 = vmatmul.mubr.msk.bf16.vlgmr.msra.gmra.mrb[4].mxu0 %vm1010_vm13, %v1008_v20  ;;  %1934 = vmatmul.mubr.msk.bf16.vlgmr.msra.gmra.mrb[4].mxu1 %vm1010_vm13, %v1006_v21 }
 0x3cf   : > { %1941 = vmatprep.mubr.msk.bf16.mxu0 %vm2233_vm11, %v2232_v49  ;;  %1947 = vmatprep.mubr.msk.bf16.mxu1 %vm2233_vm11, %v2232_v49 }
 0x3d0   : > { %1938 = vmatpush3.bf16.msra.mxu0 %v2059_v42 }
 0x3d1   : > { %1939 = vmatprep.subr.bf16.mxu0 %v2232_v49 }
 0x3d4   : > { %1940 = vmatpush3.bf16.msra.mxu0 %v2060_v43 }
 0x3d5   : > { %1951 = vmatprep.subr.bf16.mxu0 %v2232_v49 }
 0x4a1   : > { %v1052_v22 = vpop.f32.mrb[4].mxu0  ;;  %v1099_v23 = vpop.f32.mrb[4].mxu1 }
 0x4a2   : > { %v1100_v25 = vadd.f32 %v1099_v23, %v1052_v22  ;;  %v1929_v26 = vpop.f32.mrb[5].mxu0  ;;  %v1935_v27 = vpop.f32.mrb[5].mxu1 }
 0x4a3   : > { %v1055_v28 = vpop.f32.mrb[6].mxu0  ;;  %v1102_v29 = vpop.f32.mrb[6].mxu1  ;;  %v2063_v26 = vld [vmem:[%s2451_s0 + $0x10] sm:$0xff]   ;;  %v1173_v27 = vsub.s32 5, %v2522_v60 }
 0x4a4   : > { %v1108_v31 = vadd.f32 %v1106_v24, %v1100_v25  ;;  %v1103_v32 = vadd.f32 %v1102_v29, %v1055_v28  ;;  %v1930_v33 = vpop.f32.mrb[7].mxu0  ;;  %v1936_v34 = vpop.f32.mrb[7].mxu1 }
 0x4a5   : > { %v1174_v28 = vrot.slane %v2526_v62, %v1173_v27 }
 0x4a6   : > { %v1109_v35 = vadd.f32 %v1107_v30, %v1103_v32  ;;  %v1110_v36 = vsel %vm863_vm10, %v1108_v31, 0.0  ;;  %v1118_v37 = vmul.f32 %v1108_v31, %v1108_v31 }
 0x4a7   : > { %1111 = vadd.xlane.f32.xlu1 %v1110_v36  ;;  %v1231_v36 = vld [vmem:[#allocation5] sm:$0xf] }
 0x4a8   : > { %v1120_v38 = vsel %vm863_vm10, %v1118_v37, 0.0  ;;  %v1113_v39 = vsel %vm863_vm10, %v1109_v35, 0.0  ;;  %v1119_v40 = vmul.f32 %v1109_v35, %v1109_v35  ;;  %v2061_v37 = vld [vmem:[%s2451_s0] sm:$0xff]  }
 0x4a9   : > { %1121 = vadd.xlane.f32.xlu0 %v1120_v38  ;;  %v2062_v38 = vld [vmem:[%s2451_s0 + $0x8] sm:$0xff]  }
 0x4aa   : > { %v1123_v41 = vsel %vm863_vm10, %v1119_v40, 0.0 }
 0x4ab   : > { %1114 = vadd.xlane.f32.xlu1 %v1113_v39  ;;  %v2064_v39 = vld [vmem:[%s2451_s0 + $0x18] sm:$0xff]  }
 0x4af   : > { %1124 = vadd.xlane.f32.xlu1 %v1123_v41 }
 0x534   : > { %v1112_v44 = vpop.xlane.xlu1 %1111 }
 0x535   : > { %v1116_v45 = vmul.f32 0.03125, %v1112_v44 }
 0x536   : > { %v1122_v46 = vpop.xlane.xlu0 %1121 }
 0x537   : > { %v1128_v47 = vmul.f32 %v1116_v45, %v1116_v45  ;;  %v1126_v48 = vmul.f32 0.03125, %v1122_v46  ;;  %v1132_v1 = vsub.f32 %v1108_v31, %v1116_v45 }
 0x538   : > { %v1115_v50 = vpop.xlane.xlu1 %1114 }
 0x539   : > { %v1130_v51 = vsub.f32 %v1126_v48, %v1128_v47  ;;  %v1117_v52 = vmul.f32 0.03125, %v1115_v50 }
 0x53b   : > { %v1134_v53 = vadd.f32 1e-05, %v1130_v51  ;;  %v1129_v55 = vmul.f32 %v1117_v52, %v1117_v52  ;;  %v1133_v9 = vsub.f32 %v1109_v35, %v1117_v52 }
 0x53c   : > { %v1125_v54 = vpop.xlane.xlu1 %1124 }
 0x53d   : > { %2069 = vrsqrt.f32 %v1134_v53  ;;  %v1127_v56 = vmul.f32 0.03125, %v1125_v54 }
 0x53f   : > { %v1131_v57 = vsub.f32 %v1127_v56, %v1129_v55 }
 0x541   : > { %v1135_v58 = vadd.f32 1e-05, %v1131_v57 }
 0x543   : > { %2071 = vrsqrt.f32 %v1135_v58 }
 0x547   : > { %v2070_v3 = vpop.eup %2069 }
 0x548   : > { %v1138_v4 = vmul.f32 %v2070_v3, %v1132_v1  ;;  %v2066_v1 = vld [vmem:[%s2456_s17 + $0x8] sm:$0xff]  }
 0x54a   : > { %v1144_v8 = vmul.f32 %v1143_v2, %v1138_v4 }
 0x54c   : > { %v1150_v10 = vadd.f32 %v1149_v5, %v1144_v8 }
 0x54d   : > { %v2072_v11 = vpop.eup %2071 }
 0x54e   : > { %v1139_v12 = vmul.f32 %v2072_v11, %v1133_v9  ;;  %v1824_v13 = vmul.f32 -1.442695, %v1150_v10  ;;  %v1415_v11 = vsub.s32 7, %v2522_v60 }
 0x550   : > { %v1145_v14 = vmul.f32 %v1143_v2, %v1139_v12  ;;  %2073 = vpow2.f32 %v1824_v13  ;;  %v862_v12 = vld [vmem:[%s2466_s23 + $0x8] sm:$0xff] }
 0x552   : > { %v1151_v15 = vadd.f32 %v1149_v5, %v1145_v14  ;;  %v1416_v14 = vrot.slane %v2526_v62, %v1415_v11 }
 0x554   : > { %v1825_v16 = vmul.f32 -1.442695, %v1151_v15 }
 0x556   : > { %2075 = vpow2.f32 %v1825_v16 }
 0x55a   : > { %v2074_v17 = vpop.eup %2073 }
 0x55b   : > { %v1158_v18 = vadd.f32 1.0, %v2074_v17 }
 0x55d   : > { %2077 = vrcp.f32 %v1158_v18 }
 0x560   : > { %v2076_v19 = vpop.eup %2075 }
 0x561   : > { %v1159_v20 = vadd.f32 1.0, %v2076_v19 }
 0x563   : > { %2079 = vrcp.f32 %v1159_v20 }
 0x567   : > { %v2078_v21 = vpop.eup %2077 }
 0x568   : > { %v1164_v23 = vmul.f32 %v2078_v21, %v1150_v10 }
 0x56d   : > { %v2080_v22 = vpop.eup %2079 }
 0x56e   : > { %v1165_v24 = vmul.f32 %v2080_v22, %v1151_v15 }
 0x570   : > { %v1166_v25 = vpack.c.bf16 %v1165_v24, %v1164_v23 }
 0x572   : > { %1942 = vmatmul.mubr.msk.bf16.vlgmr.msra.gmra.mrb[8].mxu0 %vm863_vm10, %v1166_v25 }
 0x573   : > { %1955 = vmatprep.mubr.msk.bf16.mxu0 %vm2233_vm11, %v2232_v49  ;;  %1952 = vmatpush3.bf16.msra.mxu0 %v2063_v26 }
 0x574   : > { %1953 = vmatprep.subr.bf16.mxu0 %v2232_v49 }
 0x577   : > { %1954 = vmatpush3.bf16.msra.mxu0 %v2064_v39 }
 0x578   : > { %1967 = vmatprep.subr.bf16.mxu0 %v2232_v49 }
 0x645   : > { %v1224_v29 = vpop.f32.mrb[8].mxu0 }
 0x646   : > { %v1943_v30 = vpop.f32.mrb[9].mxu0  ;;  %v1225_v32 = vadd.f32 %v1224_v29, %v1174_v28 }
 0x647   : > { %v1227_v31 = vpop.f32.mrb[10].mxu0  ;;  %v2087_v30 = vld [vmem:[%s2654_s7] sm:$0xff] (!%p1840_p10)  }
 0x648   : > { %v1228_v33 = vadd.f32 %v1227_v31, %v1174_v28  ;;  %v1944_v34 = vpop.f32.mrb[11].mxu0  ;;  %v2234_v31 = vmov (!%p1840_p10), 0.0  }
 0x64a   : > { %v1232_v35 = vpack.c.bf16 %v1228_v33, %v1225_v32  ;;  %v2090_v32 = vld [vmem:[%s2692_s20 + $0x8] sm:$0xff] (!%p1840_p10)   ;;  %v1841_v33 = vld [vmem:[#allocation9] ss:$0 sm:$0xff] (!%p1840_p10) }
 0x64c   : > { %1946 = vmatpush3.bf16.msra.mxu1 %v1232_v35 }
 0x64d   : > { %1959 = vmatprep.subr.bf16.mxu1 %v2232_v49 }
 0x64f   : > { %1948 = vmatmul.mubr.msk.bf16.vlgmr.msra.gmra.mrb[8].mxu1 %vm1233_vm14, %v1231_v36 }
 0x650   : > { %1960 = vmatpush3.bf16.msra.mxu1 %v2061_v37  ;;  %1963 = vmatprep.mubr.msk.bf16.mxu1 %vm2233_vm11, %v2232_v49 }
 0x651   : > { %1961 = vmatprep.subr.bf16.mxu1 %v2232_v49 }
 0x654   : > { %1962 = vmatpush3.bf16.msra.mxu1 %v2062_v38 }
 0x655   : > { %1983 = vmatprep.subr.bf16.mxu1 (!%p1840_p10), %v2234_v31 }
 0x657   : > { %1964 = vmatmul.mubr.msk.bf16.vlgmr.msra.gmra.mrb[12].mxu1 %vm863_vm10, %v2539_v7  ;;  %v1395_v7 = vsub.s32 6, %v2522_v60  ;;  %v2088_v60 = vld [vmem:[%s2654_s7 + $0x8] sm:$0xff] (!%p1840_p10)  }
 0x658   : > { %1987 = vmatprep.mubr.msk.bf16.mxu1 (!%p1840_p10), %vm2235_vm15, %v2234_v31 }
 0x659   : > { %v1396_v50 = vrot.slane %v2526_v62, %v1395_v7  ;;  %v1438_v62 = vrot.slane %v862_v12, %v887_v63 }
 0x722   : > { %v1271_v40 = vpop.f32.mrb[8].mxu1 }
 0x723   : > { %v1285_v41 = vpack.c.bf16 %v1271_v40, %v1271_v40  ;;  %v1949_v42 = vpop.f32.mrb[9].mxu1 }
 0x724   : > { %v1274_v43 = vpop.f32.mrb[10].mxu1 }
 0x725   : > { %1956 = vmatmul.mubr.msk.bf16.vlgmr.msra.gmra.mrb[12].mxu0 %vm863_vm10, %v1285_v41  ;;  %v1950_v44 = vpop.f32.mrb[11].mxu1 }
 0x726   : > { %1971 = vmatprep.mubr.msk.bf16.mxu0 %vm2233_vm11, %v2232_v49  ;;  %1968 = vmatpush3.bf16.msra.mxu0 %v2065_v0 }
 0x727   : > { %1969 = vmatprep.subr.bf16.mxu0 %v2232_v49  ;;  %v1421_v49 = vrot.slane %v862_v12, %v882_v61 }
 0x72a   : > { %v1387_v45 = vpop.f32.mrb[12].mxu1  ;;  %1970 = vmatpush3.bf16.msra.mxu0 %v2066_v1 }
 0x72b   : > { %v1965_v46 = vpop.f32.mrb[13].mxu1  ;;  %1975 = vmatprep.subr.bf16.mxu0 (!%p1840_p10), %v2234_v31 }
 0x72c   : > { %v1390_v47 = vpop.f32.mrb[14].mxu1 }
 0x72d   : > { %v1966_v48 = vpop.f32.mrb[15].mxu1 }
 0x7f8   : > { %v1335_v51 = vpop.f32.mrb[12].mxu0 }
 0x7f9   : > { %v1388_v52 = vadd.f32 %v1387_v45, %v1335_v51  ;;  %v1957_v53 = vpop.f32.mrb[13].mxu0  ;;  %v1846_v45 = vld [vmem:[#allocation11] ss:$0 sm:$0xff] (!%p1840_p10) }
 0x7fa   : > { %v1338_v54 = vpop.f32.mrb[14].mxu0 }
 0x7fb   : > { %v1397_v55 = vadd.f32 %v1396_v50, %v1388_v52  ;;  %v1958_v56 = vpop.f32.mrb[15].mxu0 }
 0x7fd   : > { %v1398_v57 = vsel %vm863_vm10, %v1397_v55, 0.0  ;;  %v1402_v58 = vmul.f32 %v1397_v55, %v1397_v55 }
 0x7fe   : > { %1399 = vadd.xlane.f32.xlu0 %v1398_v57 }
 0x7ff   : > { %v1403_v59 = vsel %vm863_vm10, %v1402_v58, 0.0 }
 0x800   : > { %1404 = vadd.xlane.f32.xlu1 %v1403_v59 }
 0x88b   : > { %v1400_v2 = vpop.xlane.xlu0 %1399 }
 0x88c   : > { %v1401_v3 = vmul.f32 0.03125, %v1400_v2 }
 0x88d   : > { %v1405_v4 = vpop.xlane.xlu1 %1404 }
 0x88e   : > { %v1407_v5 = vmul.f32 %v1401_v3, %v1401_v3  ;;  %v1406_v8 = vmul.f32 0.03125, %v1405_v4  ;;  %v1409_v13 = vsub.f32 %v1397_v55, %v1401_v3 }
 0x890   : > { %v1408_v9 = vsub.f32 %v1406_v8, %v1407_v5 }
 0x892   : > { %v1410_v10 = vadd.f32 1e-05, %v1408_v9 }
 0x894   : > { %2081 = vrsqrt.f32 %v1410_v10 }
 0x89e   : > { %v2082_v15 = vpop.eup %2081 }
 0x89f   : > { %v1412_v16 = vmul.f32 %v2082_v15, %v1409_v13 }
 0x8a1   : > { %v1417_v17 = vmul.f32 %v1416_v14, %v1412_v16 }
 0x8a3   : > { %v1422_v18 = vadd.f32 %v1421_v49, %v1417_v17 }
 0x8a5   : > { %v1836_v19 = vmul.f32 -1.442695, %v1422_v18 }
 0x8a7   : > { %2083 = vpow2.f32 %v1836_v19 }
 0x8b1   : > { %v2084_v20 = vpop.eup %2083 }
 0x8b2   : > { %v1426_v21 = vadd.f32 1.0, %v2084_v20 }
 0x8b4   : > { %2085 = vrcp.f32 %v1426_v21 }
 0x8be   : > { %v2086_v22 = vpop.eup %2085 }
 0x8bf   : > { %v1429_v23 = vmul.f32 %v2086_v22, %v1422_v18 }
 0x8c1   : > { %v1430_v24 = vpack.c.bf16 %v1429_v23, %v1429_v23 }
 0x8c3   : > { %1972 = vmatmul.mubr.msk.bf16.vlgmr.msra.gmra.mrb[16].mxu0 %vm863_vm10, %v1430_v24 }
 0x8c4   : > { %1976 = vmatpush3.bf16.msra.mxu0 (!%p1840_p10), %v2087_v30  ;;  %1979 = vmatprep.mubr.msk.bf16.mxu0 (!%p1840_p10), %vm2235_vm15, %v2234_v31 }
 0x8c5   : > { %1977 = vmatprep.subr.bf16.mxu0 (!%p1840_p10), %v2234_v31 }
 0x8c8   : > { %1978 = vmatpush3.bf16.msra.mxu0 (!%p1840_p10), %v2088_v60 }
 0x995   : > { %1499 = sbr.rel (%p1840_p10) target bundleno = 2920 (0xb68), region = 108 }
 0x996   : > { %v1488_v25 = vpop.f32.mrb[16].mxu0 }
 0x997   : > { %v1489_v26 = vadd.f32 %v1488_v25, %v1438_v62  ;;  %v1973_v27 = vpop.f32.mrb[17].mxu0 }
 0x998   : > { %v1491_v28 = vpop.f32.mrb[18].mxu0 }
 0x999   : > { %v1494_v61 = vadd.f32 %v1489_v26, %v2535_v6  ;;  %v1974_v29 = vpop.f32.mrb[19].mxu0  ;;  %v2089_v6 = vld [vmem:[%s2692_s20] sm:$0xff] (!%p1840_p10)  }
 0x99a   : > { %1984 = vmatpush3.bf16.msra.mxu1 (!%p1840_p10), %v2089_v6 }
 0x99b   : > { %1495 = vst.msk [vmem:[#allocation2] sm:$0xff] %vm863_vm10, %v1494_v61  ;;  %v1500_v63 = vpack.c.bf16 (!%p1840_p10), %v1494_v61, %v1494_v61  ;;  %1985 = vmatprep.subr.bf16.mxu1 (!%p1840_p10), %v2234_v31 }
 0x99d   : > { %1980 = vmatmul.mubr.msk.bf16.vlgmr.msra.gmra.mrb[0].mxu0 %vm863_vm10, %v1500_v63 }
 0x99e   : > { %1986 = vmatpush3.bf16.msra.mxu1 %v2090_v32 }
 0xa70   : > { %v1561_v34 = vpop.f32.mrb[0].mxu0 }
 0xa71   : > { %v1562_v35 = vadd.f32 %v1841_v33, %v1561_v34  ;;  %v1981_v36 = vpop.f32.mrb[1].mxu0 }
 0xa72   : > { %v1564_v37 = vpop.f32.mrb[2].mxu0 }
 0xa73   : > { %v1845_v38 = vmul.f32 -1.442695, %v1562_v35  ;;  %v1982_v39 = vpop.f32.mrb[3].mxu0 }
 0xa75   : > { %2091 = vpow2.f32 %v1845_v38 }
 0xa7f   : > { %v2092_v40 = vpop.eup %2091 }
 0xa80   : > { %v1570_v41 = vadd.f32 1.0, %v2092_v40 }
 0xa82   : > { %2093 = vrcp.f32 %v1570_v41 }
 0xa8c   : > { %v2094_v42 = vpop.eup %2093 }
 0xa8d   : > { %v1573_v43 = vmul.f32 %v2094_v42, %v1562_v35 }
 0xa8f   : > { %v1574_v44 = vpack.c.bf16 %v1573_v43, %v1573_v43 }
 0xa91   : > { %1988 = vmatmul.mubr.msk.bf16.vlgmr.msra.gmra.mrb[0].mxu1 %vm863_vm10, %v1574_v44 }
 0xb64   : > { %v1635_v46 = vpop.f32.mrb[0].mxu1 }
 0xb65   : > { %v1636_v47 = vadd.f32 %v1846_v45, %v1635_v46  ;;  %v1989_v48 = vpop.f32.mrb[1].mxu1 }
 0xb66   : > { %v1638_v7 = vpop.f32.mrb[2].mxu1 }
 0xb67   : > { %1641 = vst [vmem:[#allocation12] sm:$0xff] %v1636_v47  ;;  %v1990_v50 = vpop.f32.mrb[3].mxu1 }
 0xb68 PF: > { %p2023_p11 = scmp.eq.s32.totalorder %s2333_s25, 1  ;;  %s2236_s24 = smov [#allocation12]  }
 0xb69   : > { %s1649_s18 = sshll.u32 %s2236_s24, 4  ;;  %s1650_s18 = int_to_ptr.vmem [resolvable:$true] %s1649_s18 }
 0xb6a   : > { %s2179_s21 = scalar_lea.vmem %s1650_s18, 128  ;;  %p2186_p1 = scmp.lt.s32.totalorder %s1650_s18, %s1650_s18 }
 0xb6b   : > { %p2180_p12 = scmp.ne.s32.totalorder %s1650_s18, %s2179_s21  ;;  %p2187_p5 = scmp.lt.s32.totalorder %s2179_s21, %s2179_s21 }
 0xb6d   : > { %p2181_p13 = pnand %p2180_p12, %p2023_p11  ;;  %p2188_p7 = por %p2187_p5, %p2186_p1 }
 0xb6f   : > { %p2182_p0 = pneg %p2181_p13 }
 0xb71   : > { %p2189_p8 = pnand %p2188_p7, %p2182_p0 }
 0xb73   : > { %2192 = shalt.err (!%p2189_p8)
}
 0xb74   : > { %s2693_s27 = sld [smem:[#allocation22_spill]] }
 0xb7a   : > { %s2193_s1 = scalar_lea.hbm %s2693_s27, 128 }
 0xb7b   : > { %p2194_p9 = scmp.ne.s32.totalorder %s2693_s27, %s2193_s1  ;;  %p2199_p4 = scmp.lt.u32.totalorder %s2193_s1, %s2693_s27 }
 0xb7d   : > { %p2195_p2 = pnand %p2194_p9, %p2023_p11 }
 0xb7f   : > { %p2196_p3 = pneg %p2195_p2 }
 0xb81   : > { %p2201_p6 = pnand %p2199_p4, %p2196_p3 }
 0xb83   : > { %2204 = shalt.err (!%p2201_p6)
}
 0xb84   : > { %2004 = dma.vmem_to_hbm [thread:$0]  (%p2023_p11), %s1650_s18, 128, %s2693_s27, [#allocation8]  }
 0xb85   : > { %2218 = dma.done.wait (%p2023_p11), [#allocation8], 128  }
 0xb86   : > { %2220 = vsyncadd (%p2023_p11), [#allocation8], 4294967168 }
 0xb87 PF: > { %s2694_s28 = sld [smem:[#allocation16_spill]] }
 0xb8d   : > { %s30_s24 = sadd.s32 1, %s2694_s28  }
 0xb8e   : > { %p27_p10 = scmp.ge.s32.totalorder %s30_s24, 4  }
 0xb90   :  { %29 = sbr.rel (!%p27_p10) target bundleno = 10 (0xa), region = 151 }
 0xb97   :  { %1662 = vsyncpa [#allocation7], 1 }
 0xb98   :  { %1664 = vsyncpa [#allocation7 + $0x1], 1 }
 0xb99   :  { %1665 = vsyncpa [#allocation10], 1 }
 0xb9a   :  { %1666 = vsyncpa [#allocation8], 1 }
 0xb9b   :  { %1668 = vsyncpa [#allocation8 + $0x1], 1 }

</bundles_post_ra>
